<compile_context>
chip_gen: v7x
topology: tpu7x:2x2x1
jax: 0.10.0
libtpu: 0.0.40
codegen_flags: <defaults>
</compile_context>

<pallas_src>
import functools

import jax
import jax.numpy as jnp
from jax.experimental import pallas as pl
from jax.experimental.pallas import tpu as pltpu


def _round_up(x, m):
    return ((x + m - 1) // m) * m


# ---------------------------------------------------------------------------
# Fused kernel: diffusion recurrence + single projection GEMM, one batch tile
# per grid step.
# ---------------------------------------------------------------------------
def _dgc_kernel(supports_ref, x_ref, w_ref, b_ref, o_ref, xall_ref, *,
                supports_len, max_diffusion_step, batch_tile, input_size,
                compute_dtype):
    """Per-grid-step ref shapes:
      supports_ref : (S, Np, Np)     dense supports, VMEM-resident across steps
      x_ref        : (Np, Bt*I)      [inputs ; state], node-major, Bt batch elems
      w_ref        : (M*I, Op)       weight, rows ordered (m major, i minor)
      b_ref        : (1, Op)         bias (zero padded to Op)
      o_ref        : (Bt*Np, Op)     output rows ordered (batch major, node minor)
      xall_ref     : (Bt*Np, M*I)    VMEM scratch: fused LHS of the projection GEMM
    """
    npad = supports_ref.shape[-1]
    i_sz = input_size
    bt = batch_tile

    def mm(a, b):
        return jnp.dot(a.astype(compute_dtype), b.astype(compute_dtype),
                       preferred_element_type=jnp.float32)

    def scatter(term, m):
        # term: (Np, Bt*I). Write each batch element's (Np, I) slab into column
        # block m of x_all (static row / lane offsets -> masked vector stores).
        t = term.astype(xall_ref.dtype)
        for b in range(bt):
            xall_ref[b * npad:(b + 1) * npad, m * i_sz:(m + 1) * i_sz] = (
                t[:, b * i_sz:(b + 1) * i_sz])

    x0 = x_ref[...]                                   # (Np, Bt*I)  == T_0
    scatter(x0, 0)
    if max_diffusion_step > 0:
        # Faithful to the PyTorch loop: x0 (x_prev here) carries across supports.
        x_prev = x0.astype(jnp.float32)
        m = 1
        for s in range(supports_len):                 # static unroll
            a = supports_ref[s]                       # (Np, Np)
            x1 = mm(a, x_prev)
            scatter(x1, m)
            m += 1
            for _ in range(2, max_diffusion_step + 1):
                x2 = 2.0 * mm(a, x1) - x_prev
                scatter(x2, m)
                m += 1
                x1, x_prev = x2, x1

    # One dense projection GEMM over the whole batch tile, then bias.
    out = mm(xall_ref[...], w_ref[...]) + b_ref[...]  # (Bt*Np, Op) f32
    o_ref[...] = out.astype(o_ref.dtype)


# ---------------------------------------------------------------------------
# Hoisted (forward-invariant) preprocessing of the static operands.
# ---------------------------------------------------------------------------
def prepare_dgc_params(supports, weight, biases, *, num_nodes, input_size,
                       output_size, max_diffusion_step,
                       compute_dtype=jnp.float32):
    supports = jnp.asarray(supports, jnp.float32)
    weight = jnp.asarray(weight, jnp.float32)
    biases = jnp.asarray(biases, jnp.float32)
    supports_len = supports.shape[0]
    num_matrices = supports_len * max_diffusion_step + 1
    n_pad = _round_up(num_nodes, 128)      # full MXU tiles on the graph dim
    o_pad = _round_up(output_size, 128)    # lane-dense output stores

    if n_pad != num_nodes:
        supports = jnp.pad(
            supports, ((0, 0), (0, n_pad - num_nodes), (0, n_pad - num_nodes)))

    # torch weight rows are indexed i * num_matrices + m; regroup to (m major,
    # i minor) so the flattened rows match the x_all scratch column layout.
    w_flat = jnp.transpose(
        weight.reshape(input_size, num_matrices, output_size),
        (1, 0, 2)).reshape(num_matrices * input_size, output_size)
    if o_pad != output_size:
        w_flat = jnp.pad(w_flat, ((0, 0), (0, o_pad - output_size)))
        biases = jnp.pad(biases, (0, o_pad - output_size))

    return dict(
        supports=supports.astype(compute_dtype),
        w_flat=w_flat.astype(compute_dtype),
        bias=biases.reshape(1, o_pad).astype(jnp.float32),
        num_nodes=num_nodes, n_pad=n_pad, o_pad=o_pad,
        input_size=input_size, output_size=output_size,
        supports_len=supports_len, max_diffusion_step=max_diffusion_step,
        num_matrices=num_matrices, compute_dtype=compute_dtype)


# ---------------------------------------------------------------------------
# Hot-path wrapper reproducing DiffusionGraphConv.forward semantics.
# ---------------------------------------------------------------------------
def diffusion_graph_conv(inputs, state, params, *, batch_tile=None):
    p = params
    n, npad, i_sz = p["num_nodes"], p["n_pad"], p["input_size"]
    o_sz, opad = p["output_size"], p["o_pad"]
    s_len, k_max = p["supports_len"], p["max_diffusion_step"]
    m_mats = p["num_matrices"]
    cdt = p["compute_dtype"]

    batch = inputs.shape[0]
    inputs = inputs.reshape(batch, n, -1)
    state = state.reshape(batch, n, -1)
    x = jnp.concatenate([inputs, state], axis=2)      # (B, N, I)
    assert x.shape[2] == i_sz, (x.shape, i_sz)

    if batch_tile is None:
        # >=2 grid steps whenever batch >= 2 (keeps both v7x TensorCores busy),
        # up to 8 batch elements per step for MXU lane utilization.
        batch_tile = max(1, min(8, batch // 2)) if batch >= 2 else 1
    bt = int(batch_tile)
    nbt = pl.cdiv(batch, bt)
    b_pad = nbt * bt

    # Node-major layout per batch tile: rows = (tile, node), cols = (b_in_tile, i)
    x = jnp.pad(x.astype(cdt), ((0, b_pad - batch), (0, npad - n), (0, 0)))
    x = x.reshape(nbt, bt, npad, i_sz).transpose(0, 2, 1, 3)
    x = x.reshape(nbt * npad, bt * i_sz)

    kernel = functools.partial(
        _dgc_kernel, supports_len=s_len, max_diffusion_step=k_max,
        batch_tile=bt, input_size=i_sz, compute_dtype=cdt)

    itemsize = jnp.dtype(cdt).itemsize
    flops = (2 * s_len * k_max * npad * npad * (b_pad * i_sz)
             + 2 * b_pad * npad * (m_mats * i_sz) * opad)
    bytes_accessed = (s_len * npad * npad * itemsize
                      + b_pad * npad * i_sz * itemsize
                      + m_mats * i_sz * opad * itemsize
                      + opad * 4 + b_pad * npad * opad * 4)
    cost = pl.CostEstimate(flops=flops, transcendentals=0,
                           bytes_accessed=bytes_accessed)

    vmem_bytes = (2 * s_len * npad * npad * itemsize       # supports (<=2 buffers)
                  + 2 * npad * bt * i_sz * itemsize        # x (double buffered)
                  + 2 * m_mats * i_sz * opad * itemsize    # weight
                  + 2 * opad * 4                           # bias
                  + 2 * bt * npad * opad * 4               # out (double buffered)
                  + bt * npad * m_mats * i_sz * itemsize)  # x_all scratch
    vmem_limit = int(max(32 * 2**20, min(96 * 2**20, 2 * vmem_bytes)))

    def invoke(single_buffer_constants):
        if single_buffer_constants:
            # supports / weight never change across grid steps -> one buffer each.
            const_kw = dict(pipeline_mode=pl.Buffered(1))
        else:
            const_kw = {}
        in_specs = [
            pl.BlockSpec((s_len, npad, npad), lambda t: (0, 0, 0), **const_kw),
            pl.BlockSpec((npad, bt * i_sz), lambda t: (t, 0)),
            pl.BlockSpec((m_mats * i_sz, opad), lambda t: (0, 0), **const_kw),
            pl.BlockSpec((1, opad), lambda t: (0, 0)),
        ]
        out_spec = pl.BlockSpec((bt * npad, opad), lambda t: (t, 0))
        return pl.pallas_call(
            kernel,
            grid=(nbt,),
            in_specs=in_specs,
            out_specs=out_spec,
            out_shape=jax.ShapeDtypeStruct((b_pad * npad, opad), jnp.float32),
            scratch_shapes=[pltpu.VMEM((bt * npad, m_mats * i_sz), cdt)],
            compiler_params=pltpu.CompilerParams(
                dimension_semantics=("parallel",),
                vmem_limit_bytes=vmem_limit),
            cost_estimate=cost,
        )(p["supports"], x, p["w_flat"], p["bias"])

    try:
        out = invoke(True)
    except Exception:
        # pipeline_mode=pl.Buffered(1) unsupported on this JAX version: fall back
        # to default double buffering (identical results, slightly more VMEM).
        out = invoke(False)

    out = out.reshape(b_pad, npad, opad)[:batch, :n, :o_sz]
    return out.reshape(batch, n * o_sz)


# ---------------------------------------------------------------------------
# Pure-JAX reference mirroring the torch code exactly (for the correctness check)
# ---------------------------------------------------------------------------
def reference_forward(inputs, state, supports, weight, biases, *,
                      num_nodes, output_size, max_diffusion_step):
    batch_size = inputs.shape[0]
    supports_len = supports.shape[0]
    num_matrices = supports_len * max_diffusion_step + 1

    inputs = inputs.reshape(batch_size, num_nodes, -1)
    state = state.reshape(batch_size, num_nodes, -1)
    xin = jnp.concatenate([inputs, state], axis=2)
    input_size = xin.shape[2]

    # (B, N, I) -> (N, I, B) -> (N, I*B)   (the two torch.transpose calls)
    x0 = jnp.transpose(xin, (1, 2, 0)).reshape(num_nodes, input_size * batch_size)

    xs = [x0]
    if max_diffusion_step > 0:
        for s in range(supports_len):
            a = supports[s]
            x1 = a @ x0
            xs.append(x1)
            for _ in range(2, max_diffusion_step + 1):
                x2 = 2.0 * (a @ x1) - x0
                xs.append(x2)
                x1, x0 = x2, x1      # torch carries x0 across supports as well
    x = jnp.stack(xs, axis=0).reshape(num_matrices, num_nodes, input_size, batch_size)
    x = jnp.transpose(x, (3, 1, 2, 0)).reshape(
        batch_size * num_nodes, input_size * num_matrices)
    x = x @ weight + biases
    return x.reshape(batch_size, num_nodes * output_size)


if __name__ == "__main__":
    def run_case(batch_size, num_nodes, input_dim, hid_dim, max_diffusion_step,
                 supports_len, output_dim, batch_tile, seed):
        input_size = input_dim + hid_dim
        num_matrices = supports_len * max_diffusion_step + 1

        key = jax.random.PRNGKey(seed)
        k_in, k_st, k_sup, k_w = jax.random.split(key, 4)

        # forward() inputs: (B, N*input_dim), (B, N*hid_dim)
        inputs = jax.random.normal(
            k_in, (batch_size, num_nodes * input_dim), jnp.float32)
        state = jax.random.normal(
            k_st, (batch_size, num_nodes * hid_dim), jnp.float32)

        # dense "supports" (random-walk-like matrices), stacked (S, N, N)
        raw = jax.random.uniform(
            k_sup, (supports_len, num_nodes, num_nodes), jnp.float32)
        supports = raw / jnp.sum(raw, axis=-1, keepdims=True)

        # parameters: xavier_normal_(gain=1.414) weight, constant bias_start=0.1
        fan_in = input_size * num_matrices
        std = 1.414 * (2.0 / (fan_in + output_dim)) ** 0.5
        weight = std * jax.random.normal(k_w, (fan_in, output_dim), jnp.float32)
        biases = jnp.full((output_dim,), 0.1, jnp.float32)

        params = prepare_dgc_params(
            supports, weight, biases,
            num_nodes=num_nodes, input_size=input_size, output_size=output_dim,
            max_diffusion_step=max_diffusion_step)

        out = diffusion_graph_conv(inputs, state, params, batch_tile=batch_tile)
        out = jax.block_until_ready(out)

        with jax.default_matmul_precision("highest"):
            ref = reference_forward(
                inputs, state, supports, weight, biases,
                num_nodes=num_nodes, output_size=output_dim,
                max_diffusion_step=max_diffusion_step)
        ref = jax.block_until_ready(ref)

        assert out.shape == (batch_size, num_nodes * output_dim), out.shape
        err = float(jnp.max(jnp.abs(out - ref)))
        assert jnp.allclose(out, ref, atol=1e-4, rtol=1e-5), err
        return err

    # Case 1: default tiling -> Bt=1, 2 parallel grid steps.
    run_case(batch_size=2, num_nodes=16, input_dim=4, hid_dim=8,
             max_diffusion_step=2, supports_len=2, output_dim=8,
             batch_tile=None, seed=0)
    # Case 2: Bt=2 batch tile with batch padding (5 -> 6); exercises the in-kernel
    # per-batch scatter into the fused x_all scratch and the single big GEMM.
    run_case(batch_size=5, num_nodes=16, input_dim=4, hid_dim=8,
             max_diffusion_step=2, supports_len=2, output_dim=8,
             batch_tile=2, seed=0)

    print("KERNEL_OK")
</pallas_src>

<mosaic_0001>
module attributes {stable_mosaic.version = 11 : i64} {
  func.func @_dgc_kernel(%arg0: i32, %arg1: memref<2x128x128xf32, #tpu.memory_space<vmem>>, %arg2: memref<128x12xf32, #tpu.memory_space<vmem>>, %arg3: memref<60x128xf32, #tpu.memory_space<vmem>>, %arg4: memref<1x128xf32, #tpu.memory_space<vmem>>, %arg5: memref<128x128xf32, #tpu.memory_space<vmem>>, %arg6: memref<128x60xf32, #tpu.memory_space<vmem>>) attributes {dimension_semantics = [#tpu.dimension_semantics<parallel>], iteration_bounds = array<i64: 2>, scalar_prefetch = 0 : i64, scratch_operands = 1 : i64, tpu.core_type = #tpu.core_type<tc>, window_params = [{pipeline_mode = #tpu.pipeline_mode<synchronous>, transform_indices = @transform_0, window_bounds = array<i64: 2, 128, 128>}, {transform_indices = @transform_1, window_bounds = array<i64: 128, 12>}, {pipeline_mode = #tpu.pipeline_mode<synchronous>, transform_indices = @transform_2, window_bounds = array<i64: 60, 128>}, {pipeline_mode = #tpu.pipeline_mode<synchronous>, transform_indices = @transform_3, window_bounds = array<i64: 1, 128>}, {transform_indices = @transform_4, window_bounds = array<i64: 128, 128>}]} {
    %c0 = arith.constant 0 : index
    %c0_0 = arith.constant 0 : index
    %0 = vector.load %arg2[%c0, %c0_0] : memref<128x12xf32, #tpu.memory_space<vmem>>, vector<128x12xf32>
    %c0_1 = arith.constant 0 : index
    %c0_2 = arith.constant 0 : index
    %1 = vector.load %arg6[%c0_1, %c0_2] : memref<128x60xf32, #tpu.memory_space<vmem>>, vector<128x12xf32>
    tpu.vector_store %arg6[%c0_1, %c0_2], %0 {strides = array<i32>} : memref<128x60xf32, #tpu.memory_space<vmem>>, vector<128x12xf32>,
    %c0_3 = arith.constant 0 : index
    %c0_4 = arith.constant 0 : index
    %c0_5 = arith.constant 0 : index
    %2 = vector.load %arg1[%c0_3, %c0_4, %c0_5] : memref<2x128x128xf32, #tpu.memory_space<vmem>>, vector<1x128x128xf32>
    %3 = vector.shape_cast %2 : vector<1x128x128xf32> to vector<128x128xf32>
    %cst = arith.constant dense<0.000000e+00> : vector<128x12xf32>
    %4 = tpu.matmul %3, %0, %cst {dimension_numbers = #tpu.dot_dimension_numbers<[1], [0], [0], [1], [0, 0, 1, 1], [], []>} : vector<128x128xf32>, vector<128x12xf32>, vector<128x12xf32> -> vector<128x12xf32>
    %c0_6 = arith.constant 0 : index
    %c12 = arith.constant 12 : index
    %5 = vector.load %arg6[%c0_6, %c12] : memref<128x60xf32, #tpu.memory_space<vmem>>, vector<128x12xf32>
    tpu.vector_store %arg6[%c0_6, %c12], %4 {strides = array<i32>} : memref<128x60xf32, #tpu.memory_space<vmem>>, vector<128x12xf32>,
    %cst_7 = arith.constant dense<0.000000e+00> : vector<128x12xf32>
    %6 = tpu.matmul %3, %4, %cst_7 {dimension_numbers = #tpu.dot_dimension_numbers<[1], [0], [0], [1], [0, 0, 1, 1], [], []>} : vector<128x128xf32>, vector<128x12xf32>, vector<128x12xf32> -> vector<128x12xf32>
    %cst_8 = arith.constant 2.000000e+00 : f32
    %7 = vector.broadcast %cst_8 : f32 to vector<128x12xf32>
    %8 = arith.mulf %7, %6 : vector<128x12xf32>
    %9 = arith.subf %8, %0 : vector<128x12xf32>
    %c0_9 = arith.constant 0 : index
    %c24 = arith.constant 24 : index
    %10 = vector.load %arg6[%c0_9, %c24] : memref<128x60xf32, #tpu.memory_space<vmem>>, vector<128x12xf32>
    tpu.vector_store %arg6[%c0_9, %c24], %9 {strides = array<i32>} : memref<128x60xf32, #tpu.memory_space<vmem>>, vector<128x12xf32>,
    %c1 = arith.constant 1 : index
    %c0_10 = arith.constant 0 : index
    %c0_11 = arith.constant 0 : index
    %11 = vector.load %arg1[%c1, %c0_10, %c0_11] : memref<2x128x128xf32, #tpu.memory_space<vmem>>, vector<1x128x128xf32>
    %12 = vector.shape_cast %11 : vector<1x128x128xf32> to vector<128x128xf32>
    %cst_12 = arith.constant dense<0.000000e+00> : vector<128x12xf32>
    %13 = tpu.matmul %12, %4, %cst_12 {dimension_numbers = #tpu.dot_dimension_numbers<[1], [0], [0], [1], [0, 0, 1, 1], [], []>} : vector<128x128xf32>, vector<128x12xf32>, vector<128x12xf32> -> vector<128x12xf32>
    %c0_13 = arith.constant 0 : index
    %c36 = arith.constant 36 : index
    %14 = vector.load %arg6[%c0_13, %c36] : memref<128x60xf32, #tpu.memory_space<vmem>>, vector<128x12xf32>
    tpu.vector_store %arg6[%c0_13, %c36], %13 {strides = array<i32>} : memref<128x60xf32, #tpu.memory_space<vmem>>, vector<128x12xf32>,
    %cst_14 = arith.constant dense<0.000000e+00> : vector<128x12xf32>
    %15 = tpu.matmul %12, %13, %cst_14 {dimension_numbers = #tpu.dot_dimension_numbers<[1], [0], [0], [1], [0, 0, 1, 1], [], []>} : vector<128x128xf32>, vector<128x12xf32>, vector<128x12xf32> -> vector<128x12xf32>
    %cst_15 = arith.constant 2.000000e+00 : f32
    %16 = vector.broadcast %cst_15 : f32 to vector<128x12xf32>
    %17 = arith.mulf %16, %15 : vector<128x12xf32>
    %18 = arith.subf %17, %4 : vector<128x12xf32>
    %c0_16 = arith.constant 0 : index
    %c48 = arith.constant 48 : index
    %19 = vector.load %arg6[%c0_16, %c48] : memref<128x60xf32, #tpu.memory_space<vmem>>, vector<128x12xf32>
    tpu.vector_store %arg6[%c0_16, %c48], %18 {strides = array<i32>} : memref<128x60xf32, #tpu.memory_space<vmem>>, vector<128x12xf32>,
    %c0_17 = arith.constant 0 : index
    %c0_18 = arith.constant 0 : index
    %20 = vector.load %arg6[%c0_17, %c0_18] : memref<128x60xf32, #tpu.memory_space<vmem>>, vector<128x60xf32>
    %c0_19 = arith.constant 0 : index
    %c0_20 = arith.constant 0 : index
    %21 = vector.load %arg3[%c0_19, %c0_20] : memref<60x128xf32, #tpu.memory_space<vmem>>, vector<60x128xf32>
    %cst_21 = arith.constant dense<0.000000e+00> : vector<128x128xf32>
    %22 = tpu.matmul %20, %21, %cst_21 {dimension_numbers = #tpu.dot_dimension_numbers<[1], [0], [0], [1], [0, 0, 1, 1], [], []>} : vector<128x60xf32>, vector<60x128xf32>, vector<128x128xf32> -> vector<128x128xf32>
    %c0_22 = arith.constant 0 : index
    %c0_23 = arith.constant 0 : index
    %23 = vector.load %arg4[%c0_22, %c0_23] : memref<1x128xf32, #tpu.memory_space<vmem>>, vector<1x128xf32>
    %24 = vector.broadcast %23 : vector<1x128xf32> to vector<128x128xf32>
    %25 = arith.addf %22, %24 : vector<128x128xf32>
    %c0_24 = arith.constant 0 : index
    %c0_25 = arith.constant 0 : index
    %26 = vector.load %arg5[%c0_24, %c0_25] : memref<128x128xf32, #tpu.memory_space<vmem>>, vector<128x128xf32>
    tpu.vector_store %arg5[%c0_24, %c0_25], %25 {strides = array<i32>} : memref<128x128xf32, #tpu.memory_space<vmem>>, vector<128x128xf32>,
    return
  }
  func.func @transform_0(%arg0: i32) -> (i32, i32, i32) {
    %c0_i32 = arith.constant 0 : i32
    %c0_i32_0 = arith.constant 0 : i32
    %c0_i32_1 = arith.constant 0 : i32
    %c0_i32_2 = arith.constant 0 : i32
    return %c0_i32, %c0_i32_0, %c0_i32_1 : i32, i32, i32
  }
  func.func @transform_1(%arg0: i32) -> (i32, i32) {
    %c0_i32 = arith.constant 0 : i32
    %c0_i32_0 = arith.constant 0 : i32
    return %arg0, %c0_i32 : i32, i32
  }
  func.func @transform_2(%arg0: i32) -> (i32, i32) {
    %c0_i32 = arith.constant 0 : i32
    %c0_i32_0 = arith.constant 0 : i32
    %c0_i32_1 = arith.constant 0 : i32
    return %c0_i32, %c0_i32_0 : i32, i32
  }
  func.func @transform_3(%arg0: i32) -> (i32, i32) {
    %c0_i32 = arith.constant 0 : i32
    %c0_i32_0 = arith.constant 0 : i32
    %c0_i32_1 = arith.constant 0 : i32
    return %c0_i32, %c0_i32_0 : i32, i32
  }
  func.func @transform_4(%arg0: i32) -> (i32, i32) {
    %c0_i32 = arith.constant 0 : i32
    %c0_i32_0 = arith.constant 0 : i32
    return %arg0, %c0_i32 : i32, i32
  }
}

module attributes {stable_mosaic.version = 11 : i64} {
  func.func @_dgc_kernel(%arg0: i32, %arg1: memref<2x128x128xf32, #tpu.memory_space<vmem>>, %arg2: memref<128x12xf32, #tpu.memory_space<vmem>>, %arg3: memref<60x128xf32, #tpu.memory_space<vmem>>, %arg4: memref<1x128xf32, #tpu.memory_space<vmem>>, %arg5: memref<128x128xf32, #tpu.memory_space<vmem>>, %arg6: memref<128x60xf32, #tpu.memory_space<vmem>>) attributes {dimension_semantics = [#tpu.dimension_semantics<parallel>], iteration_bounds = array<i64: 2>, scalar_prefetch = 0 : i64, scratch_operands = 1 : i64, tpu.core_type = #tpu.core_type<tc>, window_params = [{pipeline_mode = #tpu.pipeline_mode<synchronous>, transform_indices = @transform_0, window_bounds = array<i64: 2, 128, 128>}, {transform_indices = @transform_1, window_bounds = array<i64: 128, 12>}, {pipeline_mode = #tpu.pipeline_mode<synchronous>, transform_indices = @transform_2, window_bounds = array<i64: 60, 128>}, {pipeline_mode = #tpu.pipeline_mode<synchronous>, transform_indices = @transform_3, window_bounds = array<i64: 1, 128>}, {transform_indices = @transform_4, window_bounds = array<i64: 128, 128>}]} {
    %c0 = arith.constant 0 : index
    %c0_0 = arith.constant 0 : index
    %0 = vector.load %arg2[%c0, %c0_0] : memref<128x12xf32, #tpu.memory_space<vmem>>, vector<128x12xf32>
    %c0_1 = arith.constant 0 : index
    %c0_2 = arith.constant 0 : index
    %1 = vector.load %arg6[%c0_1, %c0_2] : memref<128x60xf32, #tpu.memory_space<vmem>>, vector<128x12xf32>
    tpu.vector_store %arg6[%c0_1, %c0_2], %0 {strides = array<i32>} : memref<128x60xf32, #tpu.memory_space<vmem>>, vector<128x12xf32>,
    %c0_3 = arith.constant 0 : index
    %c0_4 = arith.constant 0 : index
    %c0_5 = arith.constant 0 : index
    %2 = vector.load %arg1[%c0_3, %c0_4, %c0_5] : memref<2x128x128xf32, #tpu.memory_space<vmem>>, vector<1x128x128xf32>
    %3 = vector.shape_cast %2 : vector<1x128x128xf32> to vector<128x128xf32>
    %cst = arith.constant dense<0.000000e+00> : vector<128x12xf32>
    %4 = tpu.matmul %3, %0, %cst {dimension_numbers = #tpu.dot_dimension_numbers<[1], [0], [0], [1], [0, 0, 1, 1], [], []>} : vector<128x128xf32>, vector<128x12xf32>, vector<128x12xf32> -> vector<128x12xf32>
    %c0_6 = arith.constant 0 : index
    %c12 = arith.constant 12 : index
    %5 = vector.load %arg6[%c0_6, %c12] : memref<128x60xf32, #tpu.memory_space<vmem>>, vector<128x12xf32>
    tpu.vector_store %arg6[%c0_6, %c12], %4 {strides = array<i32>} : memref<128x60xf32, #tpu.memory_space<vmem>>, vector<128x12xf32>,
    %cst_7 = arith.constant dense<0.000000e+00> : vector<128x12xf32>
    %6 = tpu.matmul %3, %4, %cst_7 {dimension_numbers = #tpu.dot_dimension_numbers<[1], [0], [0], [1], [0, 0, 1, 1], [], []>} : vector<128x128xf32>, vector<128x12xf32>, vector<128x12xf32> -> vector<128x12xf32>
    %cst_8 = arith.constant 2.000000e+00 : f32
    %7 = vector.broadcast %cst_8 : f32 to vector<128x12xf32>
    %8 = arith.mulf %7, %6 : vector<128x12xf32>
    %9 = arith.subf %8, %0 : vector<128x12xf32>
    %c0_9 = arith.constant 0 : index
    %c24 = arith.constant 24 : index
    %10 = vector.load %arg6[%c0_9, %c24] : memref<128x60xf32, #tpu.memory_space<vmem>>, vector<128x12xf32>
    tpu.vector_store %arg6[%c0_9, %c24], %9 {strides = array<i32>} : memref<128x60xf32, #tpu.memory_space<vmem>>, vector<128x12xf32>,
    %c1 = arith.constant 1 : index
    %c0_10 = arith.constant 0 : index
    %c0_11 = arith.constant 0 : index
    %11 = vector.load %arg1[%c1, %c0_10, %c0_11] : memref<2x128x128xf32, #tpu.memory_space<vmem>>, vector<1x128x128xf32>
    %12 = vector.shape_cast %11 : vector<1x128x128xf32> to vector<128x128xf32>
    %cst_12 = arith.constant dense<0.000000e+00> : vector<128x12xf32>
    %13 = tpu.matmul %12, %4, %cst_12 {dimension_numbers = #tpu.dot_dimension_numbers<[1], [0], [0], [1], [0, 0, 1, 1], [], []>} : vector<128x128xf32>, vector<128x12xf32>, vector<128x12xf32> -> vector<128x12xf32>
    %c0_13 = arith.constant 0 : index
    %c36 = arith.constant 36 : index
    %14 = vector.load %arg6[%c0_13, %c36] : memref<128x60xf32, #tpu.memory_space<vmem>>, vector<128x12xf32>
    tpu.vector_store %arg6[%c0_13, %c36], %13 {strides = array<i32>} : memref<128x60xf32, #tpu.memory_space<vmem>>, vector<128x12xf32>,
    %cst_14 = arith.constant dense<0.000000e+00> : vector<128x12xf32>
    %15 = tpu.matmul %12, %13, %cst_14 {dimension_numbers = #tpu.dot_dimension_numbers<[1], [0], [0], [1], [0, 0, 1, 1], [], []>} : vector<128x128xf32>, vector<128x12xf32>, vector<128x12xf32> -> vector<128x12xf32>
    %cst_15 = arith.constant 2.000000e+00 : f32
    %16 = vector.broadcast %cst_15 : f32 to vector<128x12xf32>
    %17 = arith.mulf %16, %15 : vector<128x12xf32>
    %18 = arith.subf %17, %4 : vector<128x12xf32>
    %c0_16 = arith.constant 0 : index
    %c48 = arith.constant 48 : index
    %19 = vector.load %arg6[%c0_16, %c48] : memref<128x60xf32, #tpu.memory_space<vmem>>, vector<128x12xf32>
    tpu.vector_store %arg6[%c0_16, %c48], %18 {strides = array<i32>} : memref<128x60xf32, #tpu.memory_space<vmem>>, vector<128x12xf32>,
    %c0_17 = arith.constant 0 : index
    %c0_18 = arith.constant 0 : index
    %20 = vector.load %arg6[%c0_17, %c0_18] : memref<128x60xf32, #tpu.memory_space<vmem>>, vector<128x60xf32>
    %c0_19 = arith.constant 0 : index
    %c0_20 = arith.constant 0 : index
    %21 = vector.load %arg3[%c0_19, %c0_20] : memref<60x128xf32, #tpu.memory_space<vmem>>, vector<60x128xf32>
    %cst_21 = arith.constant dense<0.000000e+00> : vector<128x128xf32>
    %22 = tpu.matmul %20, %21, %cst_21 {dimension_numbers = #tpu.dot_dimension_numbers<[1], [0], [0], [1], [0, 0, 1, 1], [], []>} : vector<128x60xf32>, vector<60x128xf32>, vector<128x128xf32> -> vector<128x128xf32>
    %c0_22 = arith.constant 0 : index
    %c0_23 = arith.constant 0 : index
    %23 = vector.load %arg4[%c0_22, %c0_23] : memref<1x128xf32, #tpu.memory_space<vmem>>, vector<1x128xf32>
    %24 = vector.broadcast %23 : vector<1x128xf32> to vector<128x128xf32>
    %25 = arith.addf %22, %24 : vector<128x128xf32>
    %c0_24 = arith.constant 0 : index
    %c0_25 = arith.constant 0 : index
    %26 = vector.load %arg5[%c0_24, %c0_25] : memref<128x128xf32, #tpu.memory_space<vmem>>, vector<128x128xf32>
    tpu.vector_store %arg5[%c0_24, %c0_25], %25 {strides = array<i32>} : memref<128x128xf32, #tpu.memory_space<vmem>>, vector<128x128xf32>,
    return
  }
  func.func @transform_0(%arg0: i32) -> (i32, i32, i32) {
    %c0_i32 = arith.constant 0 : i32
    %c0_i32_0 = arith.constant 0 : i32
    %c0_i32_1 = arith.constant 0 : i32
    %c0_i32_2 = arith.constant 0 : i32
    return %c0_i32, %c0_i32_0, %c0_i32_1 : i32, i32, i32
  }
  func.func @transform_1(%arg0: i32) -> (i32, i32) {
    %c0_i32 = arith.constant 0 : i32
    %c0_i32_0 = arith.constant 0 : i32
    return %arg0, %c0_i32 : i32, i32
  }
  func.func @transform_2(%arg0: i32) -> (i32, i32) {
    %c0_i32 = arith.constant 0 : i32
    %c0_i32_0 = arith.constant 0 : i32
    %c0_i32_1 = arith.constant 0 : i32
    return %c0_i32, %c0_i32_0 : i32, i32
  }
  func.func @transform_3(%arg0: i32) -> (i32, i32) {
    %c0_i32 = arith.constant 0 : i32
    %c0_i32_0 = arith.constant 0 : i32
    %c0_i32_1 = arith.constant 0 : i32
    return %c0_i32, %c0_i32_0 : i32, i32
  }
  func.func @transform_4(%arg0: i32) -> (i32, i32) {
    %c0_i32 = arith.constant 0 : i32
    %c0_i32_0 = arith.constant 0 : i32
    return %arg0, %c0_i32 : i32, i32
  }
}

</mosaic_0001>

<bundles_post_ra>
// kernel: tpu_custom_call.1
= control target key start
LH: loop header
LB: loop body
LE: loop exit
PB: predicated region body
PF: predicated region fallthrough
CT: control target
= control target key end

     0   :  { %9 = vsyncpa [#allocation4], 0  ;;  %s3136_s0 = inlined_call_operand.vmem [shape: f32[2,128,128], index: 0, kind: input, shape index: {}]   ;;  %s3137_s1 = inlined_call_operand.vmem [shape: f32[256,12], index: 1, kind: input, shape index: {}]   ;;  %s3138_s2 = inlined_call_operand.hbm [shape: f32[60,128], index: 2, kind: input, shape index: {}]   ;;  %s3139_s3 = inlined_call_operand.vmem [shape: f32[1,128], index: 3, kind: input, shape index: {}]   ;;  %s3140_s4 = inlined_call_operand.hbm [shape: f32[256,128], index: 4, kind: output, shape index: {}]  }
   0x1   :  { %10 = vsyncpa [#allocation5], 0 }
   0x2   :  { %12 = vsyncpa [#allocation5 + $0x1], 0  ;;  %s2391_s15 = smov 0   ;;  %s2393_s16 = smov 0  }
   0x3   :  { %s2395_s17 = smov 0   ;;  %s2397_s18 = smov 0  }
   0x4 LB: > { %s2412_s19 = sadd.s32 4294967295, %s2353_s18   ;;  %s1581_s20 = sadd.s32 4294967294, %s2353_s18   ;;  %s2353_s18 = sphi %s2397_s18, %s3183_s18   ;;  %s2349_s17 = sphi %s2395_s17, %s3182_s17   ;;  %s2345_s16 = sphi %s2393_s16, %s3181_s16   ;;  %s2341_s15 = sphi %s2391_s15, %s3180_s15  }
   0x5   : > { %s2416_s21 = sadd.s32 1, %s2353_s18   ;;  %s114_s22 = sadd.s32 1, %s2349_s17 }
   0x6   : > { %s111_s23 = ssub.s32 %s2353_s18, %s2416_s21  ;;  %p124_p0 = scmp.ne.s32.totalorder %s2349_s17, %s2345_s16 }
   0x7   : > { %p112_p1 = scmp.eq.s32.totalorder %s111_s23, 0  ;;  %p125_p2 = scmp.eq.s32.totalorder %s2412_s19, 1 }
   0x8   : > { %p130_p3 = scmp.ne.s32.totalorder %s2345_s16, %s2341_s15  ;;  %p131_p4 = scmp.eq.s32.totalorder %s1581_s20, 1 }
   0x9   : > { %s2427_s24 = scalar_select %p112_p1, %s2349_s17, %s114_s22  }
   0xa   : > { %p2429_p5 = por %p125_p2, %p124_p0  ;;  %p2433_p6 = por %p131_p4, %p130_p3 }
   0xb   : > { %p1582_p7 = scmp.ge.s32.totalorder %s2353_s18, 1  ;;  %p138_p8 = scmp.lt.s32.totalorder %s2353_s18, 3 }
   0xc   : > { %s3153_s25 = scalar_select %p2429_p5, 1, 0 }
   0xd   : > { %s3154_s26 = scalar_select %p2433_p6, 1, 0 }
   0xe   : > { %p3141_p9 = scmp.eq.s32.totalorder %s2412_s19, 0  ;;  %p2440_p10 = pnand %p1582_p7, %p138_p8 }
   0xf   : > { %s2355_s28 = smov [#allocation3]   ;;  %s2259_s7 = scalar_lea.hbm %s3138_s2, 1024 }
  0x10   : > { %s3155_s27 = scalar_select %p2440_p10, 1, 0 }
  0x11   : > { %s153_s29 = sshll.u32 %s2355_s28, 4  ;;  %p2206_p11 = pneg %p2440_p10  ;;  %s154_s29 = int_to_ptr.vmem [resolvable:$true] %s153_s29 }
  0x12   : > { %p2260_p13 = scmp.ne.s32.totalorder %s3138_s2, %s2259_s7  ;;  %p2266_p3 = scmp.lt.u32.totalorder %s2259_s7, %s3138_s2 }
  0x13   : > { %p2448_p12 = pnand %p3141_p9, %p2206_p11 }
  0x15   : > { %p2261_p0 = pneg %p2448_p12 }
  0x17   : > { %p2262_p1 = pnand %p2261_p0, %p2260_p13 }
  0x19   : > { %p2263_p2 = pneg %p2262_p1 }
  0x1b   : > { %p2268_p4 = pnand %p2266_p3, %p2263_p2 }
  0x1d   : > { %2271 = shalt.err (!%p2268_p4)
}
  0x1e   : > { %s2272_s12 = scalar_lea.vmem %s154_s29, 1024  ;;  %p2280_p9 = scmp.lt.s32.totalorder %s154_s29, %s154_s29 }
  0x1f   : > { %p2273_p7 = scmp.ne.s32.totalorder %s154_s29, %s2272_s12  ;;  %p2281_p6 = scmp.lt.s32.totalorder %s2272_s12, %s2272_s12 }
  0x21   : > { %p2275_p8 = pnand %p2273_p7, %p2261_p0  ;;  %p2282_p5 = por %p2281_p6, %p2280_p9 }
  0x23   : > { %p2276_p11 = pneg %p2275_p8 }
  0x25   : > { %p2283_p10 = pnand %p2282_p5, %p2276_p11 }
  0x27   : > { %2286 = shalt.err (!%p2283_p10)
}
  0x28   : > { %s2356_s13 = smov 128   ;;  %s2357_s14 = smov 8  }
  0x29   : > { %2209 = dma.hbm_to_vmem [thread:$0]  (!%p2448_p12), %s3138_s2, 1024, %s154_s29, [#allocation4], %s2356_s13, %s2356_s13, %s2357_s14  }
  0x2a   : > { %p3157_p13 = scmp.ne.s32.totalorder %s3155_s27, 0 }
  0x2c   : > { %181 = sbr.rel (%p3157_p13) target bundleno = 1202 (0x4b2), region = 36 }
  0x33   : > { %p3158_p1 = scmp.eq.s32.totalorder %s2412_s19, 0 }
  0x35   : > { %2332 = dma.done.wait (%p3158_p1), [#allocation4], 1024   ;;  %p3159_p0 = pmov %p3158_p1 }
  0x36   : > { %s1588_s23 = sshll.u32 %s2412_s19, 4  ;;  %vm230_vm0 = vcmask 97280   ;;  %v247_v19 = vld [vmem:[%s3136_s0] sm:$0xff]  ;;  %v2582_v25 = vld [vmem:[%s3136_s0 + $0x8] sm:$0xff]  ;;  %v2587_v26 = vld [vmem:[%s3136_s0 + $0x10] sm:$0xff]  ;;  %s2358_s27 = smov 12  }
  0x37   : > { %2334 = vsyncadd (%p3159_p0), [#allocation4], 4294966272  ;;  %p208_p5 = scmp.lt.s32.totalorder %s1588_s23, 31  ;;  %1814 = vmatprep.mubr.f32.mxu0 %v247_v19  ;;  %1870 = vmatprep.mubr.f32.mxu1 %v247_v19  ;;  %v2594_v27 = vld [vmem:[%s3136_s0 + $0x18] sm:$0xff]  ;;  %v2599_v28 = vld [vmem:[%s3136_s0 + $0x20] sm:$0xff]  ;;  %vm472_vm1 = vcmask 195680  }
  0x38   : > { %v2606_v29 = vld [vmem:[%s3136_s0 + $0x28] sm:$0xff]  ;;  %v2611_v30 = vld [vmem:[%s3136_s0 + $0x30] sm:$0xff]  ;;  %v2618_v31 = vld [vmem:[%s3136_s0 + $0x38] sm:$0xff]  ;;  %s2359_s30 = smov 36   ;;  %s2360_s5 = smov 24   ;;  %vm730_vm2 = vcmask 294080  }
  0x39   : > { %s3185_s23 = smov (!%p208_p5, %s1588_s23), 31  ;;  %v2623_v32 = vld [vmem:[%s3136_s0 + $0x40] sm:$0xff]  ;;  %v2630_v33 = vld [vmem:[%s3136_s0 + $0x48] sm:$0xff]  ;;  %v2635_v34 = vld [vmem:[%s3136_s0 + $0x50] sm:$0xff]  ;;  %vm973_vm3 = vcmask 392480   ;;  %vm1328_vm4 = vcmask 1043456  }
  0x3a   : > { %s1589_s28 = sshll.u32 %s3185_s23, 3  ;;  %v2642_v35 = vld [vmem:[%s3136_s0 + $0x58] sm:$0xff]  ;;  %v2647_v36 = vld [vmem:[%s3136_s0 + $0x60] sm:$0xff]  ;;  %v2654_v37 = vld [vmem:[%s3136_s0 + $0x68] sm:$0xff]  ;;  %vm2361_vm5 = vmmov 1   ;;  %vm1231_vm7 = vcmask 490880  }
  0x3b   : > { %s2478_s6 = scalar_lea.vmem %s3137_s1, %s1589_s28  ;;  %v2659_v38 = vld [vmem:[%s3136_s0 + $0x70] sm:$0xff]  ;;  %v2666_v39 = vld [vmem:[%s3136_s0 + $0x78] sm:$0xff]  ;;  %v2672_v40 = vld [vmem:[%s3136_s0 + $0x80] sm:$0xff]  ;;  %vm1279_vm8 = vcmask 490496   ;;  %s1629_s10 = sshll.u32 %s2412_s19, 11 }
  0x3c   : > { %v2481_v0 = vld [vmem:[%s2478_s6] sm:$0xff]  ;;  %v2484_v1 = vld [vmem:[%s2478_s6 + $0x8] sm:$0xff]  ;;  %v2487_v2 = vld [vmem:[%s2478_s6 + $0x10] sm:$0xff]  ;;  %s3087_s14 = scalar_lea.hbm %s3140_s4, %s1629_s10  ;;  %p3178_p9 = scmp.ne.s32.totalorder %s3153_s25, 0 }
  0x3d   : > { %231 = vst.msk [vmem:[#allocation2] sm:$0xff] %vm230_vm0, %v2481_v0  ;;  %232 = vst.msk [vmem:[#allocation2 + $0x8] sm:$0xff] %vm230_vm0, %v2484_v1  ;;  %v2046_v3 = vpack.c.bf16 %v2484_v1, %v2481_v0  ;;  %v2496_v4 = vld [vmem:[%s2478_s6 + $0x18] sm:$0xff]  ;;  %v2501_v5 = vld [vmem:[%s2478_s6 + $0x20] sm:$0xff]  ;;  %s2363_s22 = smov [#allocation6]  }
  0x3e   : > { %233 = vst.msk [vmem:[#allocation2 + $0x10] sm:$0xff] %vm230_vm0, %v2487_v2  ;;  %v2504_v6 = vld [vmem:[%s2478_s6 + $0x28] sm:$0xff]  ;;  %v2050_v7 = vpack.c.bf16 %v2496_v4, %v2487_v2  ;;  %234 = vst.msk [vmem:[#allocation2 + $0x18] sm:$0xff] %vm230_vm0, %v2496_v4  ;;  %v2515_v8 = vld [vmem:[%s2478_s6 + $0x30] sm:$0xff]  ;;  %s2291_s23 = sshll.u32 %s2363_s22, 4  ;;  %s2292_s23 = int_to_ptr.vmem [resolvable:$false] %s2291_s23 }
  0x3f   : > { %235 = vst.msk [vmem:[#allocation2 + $0x20] sm:$0xff] %vm230_vm0, %v2501_v5  ;;  %236 = vst.msk [vmem:[#allocation2 + $0x28] sm:$0xff] %vm230_vm0, %v2504_v6  ;;  %v2518_v9 = vld [vmem:[%s2478_s6 + $0x38] sm:$0xff]  ;;  %v2521_v10 = vld [vmem:[%s2478_s6 + $0x40] sm:$0xff]  ;;  %2047 = vmatprep.subr.bf16.mxu0 %v2046_v3  ;;  %v2054_v17 = vpack.c.bf16 %v2504_v6, %v2501_v5  ;;  %s2293_s28 = scalar_lea.vmem %s2292_s23, 4096 }
  0x40   : > { %237 = vst.msk [vmem:[#allocation2 + $0x30] sm:$0xff] %vm230_vm0, %v2515_v8  ;;  %238 = vst.msk [vmem:[#allocation2 + $0x38] sm:$0xff] %vm230_vm0, %v2518_v9  ;;  %v2528_v11 = vld [vmem:[%s2478_s6 + $0x48] sm:$0xff]  ;;  %v2533_v12 = vld [vmem:[%s2478_s6 + $0x50] sm:$0xff]  ;;  %2049 = vmatpush3.bf16.msra.mxu0 %v2046_v3  ;;  %v2058_v20 = vpack.c.bf16 %v2518_v9, %v2515_v8 }
  0x41   : > { %239 = vst.msk [vmem:[#allocation2 + $0x40] sm:$0xff] %vm230_vm0, %v2521_v10  ;;  %v2536_v13 = vld [vmem:[%s2478_s6 + $0x58] sm:$0xff]  ;;  %240 = vst.msk [vmem:[#allocation2 + $0x48] sm:$0xff] %vm230_vm0, %v2528_v11  ;;  %v2545_v14 = vld [vmem:[%s2478_s6 + $0x60] sm:$0xff]  ;;  %2051 = vmatprep.subr.bf16.mxu0 %v2050_v7  ;;  %v2062_v21 = vpack.c.bf16 %v2528_v11, %v2521_v10 }
  0x42   : > { %241 = vst.msk [vmem:[#allocation2 + $0x50] sm:$0xff] %vm230_vm0, %v2533_v12  ;;  %242 = vst.msk [vmem:[#allocation2 + $0x58] sm:$0xff] %vm230_vm0, %v2536_v13  ;;  %v2548_v15 = vld [vmem:[%s2478_s6 + $0x68] sm:$0xff]  ;;  %v2551_v16 = vld [vmem:[%s2478_s6 + $0x70] sm:$0xff]  ;;  %v2066_v22 = vpack.c.bf16 %v2536_v13, %v2533_v12 }
  0x43   : > { %243 = vst.msk [vmem:[#allocation2 + $0x60] sm:$0xff] %vm230_vm0, %v2545_v14  ;;  %244 = vst.msk [vmem:[#allocation2 + $0x68] sm:$0xff] %vm230_vm0, %v2548_v15  ;;  %v2560_v18 = vld [vmem:[%s2478_s6 + $0x78] sm:$0xff]  ;;  %v2070_v23 = vpack.c.bf16 %v2548_v15, %v2545_v14  ;;  %s2362_s6 = smov 48  }
  0x44   : > { %245 = vst.msk [vmem:[#allocation2 + $0x70] sm:$0xff] %vm230_vm0, %v2551_v16  ;;  %246 = vst.msk [vmem:[#allocation2 + $0x78] sm:$0xff] %vm230_vm0, %v2560_v18  ;;  %2053 = vmatpush3.bf16.msra.mxu0 %v2050_v7  ;;  %v2074_v24 = vpack.c.bf16 %v2560_v18, %v2551_v16  ;;  %v2752_v7 = vld [vmem:[%s3136_s0 + $0x88] sm:$0xff]  ;;  %v2767_v19 = vld [vmem:[%s3136_s0 + $0x98] sm:$0xff] }
  0x45   : > { %2055 = vmatprep.subr.bf16.mxu0 %v2054_v17  ;;  %vm2187_vm6 = vmpackc.low %vm1328_vm4, %vm2361_vm5 }
  0x48   : > { %2057 = vmatpush3.bf16.msra.mxu0 %v2054_v17  ;;  %v2759_v17 = vld [vmem:[%s3136_s0 + $0x90] sm:$0xff] }
  0x49   : > { %2059 = vmatprep.subr.bf16.mxu0 %v2058_v20 }
  0x4c   : > { %2061 = vmatpush3.bf16.msra.mxu0 %v2058_v20  ;;  %v2775_v20 = vld [vmem:[%s3136_s0 + $0xa0] sm:$0xff] }
  0x4d   : > { %2063 = vmatprep.subr.bf16.mxu0 %v2062_v21 }
  0x50   : > { %2065 = vmatpush3.bf16.msra.mxu0 %v2062_v21  ;;  %v2783_v21 = vld [vmem:[%s3136_s0 + $0xa8] sm:$0xff] }
  0x51   : > { %2067 = vmatprep.subr.bf16.mxu0 %v2066_v22 }
  0x54   : > { %2069 = vmatpush3.bf16.msra.mxu0 %v2066_v22  ;;  %v2791_v22 = vld [vmem:[%s3136_s0 + $0xb0] sm:$0xff] }
  0x55   : > { %2071 = vmatprep.subr.bf16.mxu0 %v2070_v23 }
  0x58   : > { %2073 = vmatpush3.bf16.msra.mxu0 %v2070_v23  ;;  %v2799_v23 = vld [vmem:[%s3136_s0 + $0xb8] sm:$0xff] }
  0x59   : > { %2075 = vmatprep.subr.bf16.mxu0 %v2074_v24 }
  0x5c   : > { %2077 = vmatpush3.bf16.msra.mxu0 %v2074_v24  ;;  %v2805_v24 = vld [vmem:[%s3136_s0 + $0xc0] sm:$0xff] }
  0x5f   : > { %1815 = vmatmul.mubr.f32.vlgmr.msra.gmra.mrb[0].mxu0 %v2582_v25 }
  0x60   : > { %1817 = vmatprep.mubr.f32.mxu0 %v2587_v26 }
  0x63   : > { %1818 = vmatmul.mubr.f32.gmra.mrb[2].mxu0 %v2594_v27 }
  0x64   : > { %1820 = vmatprep.mubr.f32.mxu0 %v2599_v28 }
  0x67   : > { %1821 = vmatmul.mubr.f32.gmra.mrb[4].mxu0 %v2606_v29 }
  0x68   : > { %1823 = vmatprep.mubr.f32.mxu0 %v2611_v30 }
  0x6b   : > { %1824 = vmatmul.mubr.f32.gmra.mrb[6].mxu0 %v2618_v31 }
  0x6c   : > { %1826 = vmatprep.mubr.f32.mxu0 %v2623_v32 }
  0x6f   : > { %1827 = vmatmul.mubr.f32.gmra.mrb[8].mxu0 %v2630_v33 }
  0x70   : > { %1829 = vmatprep.mubr.f32.mxu0 %v2635_v34 }
  0x73   : > { %1830 = vmatmul.mubr.f32.gmra.mrb[10].mxu0 %v2642_v35 }
  0x74   : > { %1832 = vmatprep.mubr.f32.mxu0 %v2647_v36 }
  0x77   : > { %1833 = vmatmul.mubr.f32.gmra.mrb[12].mxu0 %v2654_v37 }
  0x78   : > { %1835 = vmatprep.mubr.f32.mxu0 %v2659_v38 }
  0x7b   : > { %1836 = vmatmul.mubr.f32.gmra.mrb[14].mxu0 %v2666_v39 }
  0x7c   : > { %1926 = vmatprep.mubr.f32.mxu0 %v2672_v40 }
 0x132   : > { %v2675_v41 = vpop.f32.mrb[0].mxu0 }
 0x133   : > { %426 = vrot.lane.b32.xlu1 %v2675_v41, %s2358_s27  ;;  %v2679_v42 = vpop.f32.mrb[1].mxu0 }
 0x134   : > { %v2078_v43 = vpack.c.bf16 %v2675_v41, %v2679_v42  ;;  %424 = vrot.lane.b32.xlu0 %v2679_v42, %s2358_s27 }
 0x136   : > { %v2685_v44 = vpop.f32.mrb[2].mxu0  ;;  %2079 = vmatprep.subr.bf16.mxu1 %v2078_v43  ;;  %2111 = vmatprep.subr.bf16.mxu0 %v2078_v43 }
 0x137   : > { %v2687_v45 = vpop.f32.mrb[3].mxu0  ;;  %2081 = vmatpush3.bf16.msra.mxu1 %v2078_v43  ;;  %2113 = vmatpush3.bf16.msra.mxu0 %v2078_v43 }
 0x138   : > { %v2082_v46 = vpack.c.bf16 %v2685_v44, %v2687_v45  ;;  %430 = vrot.lane.b32.xlu0 %v2685_v44, %s2358_s27 }
 0x13a   : > { %v2693_v47 = vpop.f32.mrb[4].mxu0  ;;  %2083 = vmatprep.subr.bf16.mxu1 %v2082_v46  ;;  %2115 = vmatprep.subr.bf16.mxu0 %v2082_v46 }
 0x13b   : > { %v2695_v48 = vpop.f32.mrb[5].mxu0  ;;  %2085 = vmatpush3.bf16.msra.mxu1 %v2082_v46  ;;  %2117 = vmatpush3.bf16.msra.mxu0 %v2082_v46 }
 0x13c   : > { %v2086_v49 = vpack.c.bf16 %v2693_v47, %v2695_v48  ;;  %428 = vrot.lane.b32.xlu0 %v2687_v45, %s2358_s27 }
 0x13e   : > { %v2701_v50 = vpop.f32.mrb[6].mxu0  ;;  %2087 = vmatprep.subr.bf16.mxu1 %v2086_v49  ;;  %2119 = vmatprep.subr.bf16.mxu0 %v2086_v49 }
 0x13f   : > { %v2703_v51 = vpop.f32.mrb[7].mxu0  ;;  %2089 = vmatpush3.bf16.msra.mxu1 %v2086_v49  ;;  %2121 = vmatpush3.bf16.msra.mxu0 %v2086_v49 }
 0x140   : > { %3160 = vst [vmem:[#allocation9_spill] sm:$0xff] %v2703_v51  ;;  %v2090_v52 = vpack.c.bf16 %v2701_v50, %v2703_v51  ;;  %434 = vrot.lane.b32.xlu0 %v2693_v47, %s2358_s27 }
 0x142   : > { %v2709_v53 = vpop.f32.mrb[8].mxu0  ;;  %2091 = vmatprep.subr.bf16.mxu1 %v2090_v52  ;;  %2123 = vmatprep.subr.bf16.mxu0 %v2090_v52 }
 0x143   : > { %3161 = vst [vmem:[#allocation10_spill] sm:$0xff] %v2709_v53  ;;  %2093 = vmatpush3.bf16.msra.mxu1 %v2090_v52  ;;  %2125 = vmatpush3.bf16.msra.mxu0 %v2090_v52  ;;  %v2711_v54 = vpop.f32.mrb[9].mxu0 }
 0x144   : > { %3162 = vst [vmem:[#allocation11_spill] sm:$0xff] %v2711_v54  ;;  %442 = vrot.lane.b32.xlu1 %v2709_v53, %s2358_s27  ;;  %v2094_v55 = vpack.c.bf16 %v2709_v53, %v2711_v54  ;;  %432 = vrot.lane.b32.xlu0 %v2695_v48, %s2358_s27 }
 0x146   : > { %v2719_v56 = vpop.f32.mrb[10].mxu0  ;;  %2095 = vmatprep.subr.bf16.mxu1 %v2094_v55  ;;  %2127 = vmatprep.subr.bf16.mxu0 %v2094_v55 }
 0x147   : > { %3163 = vst [vmem:[#allocation12_spill] sm:$0xff] %v2719_v56  ;;  %2097 = vmatpush3.bf16.msra.mxu1 %v2094_v55  ;;  %2129 = vmatpush3.bf16.msra.mxu0 %v2094_v55  ;;  %v2721_v57 = vpop.f32.mrb[11].mxu0 }
 0x148   : > { %3164 = vst [vmem:[#allocation13_spill] sm:$0xff] %v2721_v57  ;;  %446 = vrot.lane.b32.xlu1 %v2719_v56, %s2358_s27  ;;  %v2098_v58 = vpack.c.bf16 %v2719_v56, %v2721_v57  ;;  %438 = vrot.lane.b32.xlu0 %v2701_v50, %s2358_s27 }
 0x14a   : > { %v2729_v59 = vpop.f32.mrb[12].mxu0  ;;  %2099 = vmatprep.subr.bf16.mxu1 %v2098_v58  ;;  %2131 = vmatprep.subr.bf16.mxu0 %v2098_v58 }
 0x14b   : > { %3165 = vst [vmem:[#allocation14_spill] sm:$0xff] %v2729_v59  ;;  %v2731_v60 = vpop.f32.mrb[13].mxu0  ;;  %2101 = vmatpush3.bf16.msra.mxu1 %v2098_v58  ;;  %2133 = vmatpush3.bf16.msra.mxu0 %v2098_v58 }
 0x14c   : > { %3166 = vst [vmem:[#allocation15_spill] sm:$0xff] %v2731_v60  ;;  %444 = vrot.lane.b32.xlu1 %v2721_v57, %s2358_s27  ;;  %v2102_v61 = vpack.c.bf16 %v2729_v59, %v2731_v60  ;;  %436 = vrot.lane.b32.xlu0 %v2703_v51, %s2358_s27 }
 0x14e   : > { %v2739_v62 = vpop.f32.mrb[14].mxu0  ;;  %2103 = vmatprep.subr.bf16.mxu1 %v2102_v61  ;;  %2135 = vmatprep.subr.bf16.mxu0 %v2102_v61 }
 0x14f   : > { %3167 = vst [vmem:[#allocation16_spill] sm:$0xff] %v2739_v62  ;;  %v2741_v63 = vpop.f32.mrb[15].mxu0  ;;  %2105 = vmatpush3.bf16.msra.mxu1 %v2102_v61  ;;  %2137 = vmatpush3.bf16.msra.mxu0 %v2102_v61 }
 0x150   : > { %3168 = vst [vmem:[#allocation17_spill] sm:$0xff] %v2741_v63  ;;  %450 = vrot.lane.b32.xlu1 %v2729_v59, %s2358_s27  ;;  %v2106_v3 = vpack.c.bf16 %v2739_v62, %v2741_v63  ;;  %440 = vrot.lane.b32.xlu0 %v2711_v54, %s2358_s27 }
 0x152   : > { %2107 = vmatprep.subr.bf16.mxu1 %v2106_v3  ;;  %2139 = vmatprep.subr.bf16.mxu0 %v2106_v3 }
 0x153   : > { %2109 = vmatpush3.bf16.msra.mxu1 %v2106_v3  ;;  %2141 = vmatpush3.bf16.msra.mxu0 %v2106_v3 }
 0x154   : > { %448 = vrot.lane.b32.xlu1 %v2731_v60, %s2358_s27 }
 0x156   : > { %1927 = vmatmul.mubr.f32.vlgmr.msra.gmra.mrb[16].mxu0 %v2752_v7  ;;  %1871 = vmatmul.mubr.f32.vlgmr.msra.gmra.mrb[0].mxu1 %v2582_v25  ;;  %v2813_v25 = vld [vmem:[%s3136_s0 + $0xc8] sm:$0xff] }
 0x157   : > { %1929 = vmatprep.mubr.f32.mxu0 %v2759_v17  ;;  %1873 = vmatprep.mubr.f32.mxu1 %v2587_v26  ;;  %v2819_v26 = vld [vmem:[%s3136_s0 + $0xd0] sm:$0xff] }
 0x158   : > { %454 = vrot.lane.b32.xlu1 %v2739_v62, %s2358_s27 }
 0x15a   : > { %1930 = vmatmul.mubr.f32.gmra.mrb[18].mxu0 %v2767_v19  ;;  %1874 = vmatmul.mubr.f32.gmra.mrb[2].mxu1 %v2594_v27  ;;  %v2827_v27 = vld [vmem:[%s3136_s0 + $0xd8] sm:$0xff] }
 0x15b   : > { %1932 = vmatprep.mubr.f32.mxu0 %v2775_v20  ;;  %1876 = vmatprep.mubr.f32.mxu1 %v2599_v28  ;;  %v2833_v28 = vld [vmem:[%s3136_s0 + $0xe0] sm:$0xff] }
 0x15c   : > { %452 = vrot.lane.b32.xlu1 %v2741_v63, %s2358_s27  ;;  %s204_s27 = sand.u32 1, %s2345_s16  }
 0x15d   : > { %s1587_s29 = sshll.u32 %s204_s27, 7  ;;  %s3095_s20 = scalar_lea.sflag [#allocation5], %s204_s27 }
 0x15e   : > { %1933 = vmatmul.mubr.f32.gmra.mrb[20].mxu0 %v2783_v21  ;;  %1877 = vmatmul.mubr.f32.gmra.mrb[4].mxu1 %v2606_v29  ;;  %v2841_v29 = vld [vmem:[%s3136_s0 + $0xe8] sm:$0xff]  ;;  %s3066_s9 = scalar_lea.vmem [#allocation6], %s1587_s29 }
 0x15f   : > { %1935 = vmatprep.mubr.f32.mxu0 %v2791_v22  ;;  %1879 = vmatprep.mubr.f32.mxu1 %v2611_v30  ;;  %v2847_v30 = vld [vmem:[%s3136_s0 + $0xf0] sm:$0xff]  ;;  %s1507_s11 = sshll.u32 %s3066_s9, 4  ;;  %s3089_s11 = int_to_ptr.vmem [resolvable:$true] %s1507_s11 }
 0x160   : > { %s2287_s19 = scalar_lea.vmem %s3089_s11, 2048  ;;  %p2294_p2 = scmp.lt.s32.totalorder %s3089_s11, %s2292_s23 }
 0x161   : > { %p2288_p6 = scmp.ne.s32.totalorder %s3089_s11, %s2287_s19  ;;  %p2295_p3 = scmp.lt.s32.totalorder %s2293_s28, %s2287_s19 }
 0x162   : > { %1936 = vmatmul.mubr.f32.gmra.mrb[22].mxu0 %v2799_v23  ;;  %1880 = vmatmul.mubr.f32.gmra.mrb[6].mxu1 %v2618_v31  ;;  %v2855_v31 = vld [vmem:[%s3136_s0 + $0xf8] sm:$0xff] }
 0x163   : > { %1938 = vmatprep.mubr.f32.mxu0 %v2805_v24  ;;  %1882 = vmatprep.mubr.f32.mxu1 %v2623_v32  ;;  %p2289_p10 = pnand %p2288_p6, %p3178_p9  ;;  %p2296_p4 = por %p2295_p3, %p2294_p2 }
 0x165   : > { %p2290_p12 = pneg %p2289_p10 }
 0x166   : > { %1939 = vmatmul.mubr.f32.gmra.mrb[24].mxu0 %v2813_v25  ;;  %1883 = vmatmul.mubr.f32.gmra.mrb[8].mxu1 %v2630_v33 }
 0x167   : > { %1941 = vmatprep.mubr.f32.mxu0 %v2819_v26  ;;  %1885 = vmatprep.mubr.f32.mxu1 %v2635_v34  ;;  %p2297_p7 = pnand %p2296_p4, %p2290_p12 }
 0x16a   : > { %1942 = vmatmul.mubr.f32.gmra.mrb[26].mxu0 %v2827_v27  ;;  %1886 = vmatmul.mubr.f32.gmra.mrb[10].mxu1 %v2642_v35 }
 0x16b   : > { %1944 = vmatprep.mubr.f32.mxu0 %v2833_v28  ;;  %1888 = vmatprep.mubr.f32.mxu1 %v2647_v36 }
 0x16e   : > { %1945 = vmatmul.mubr.f32.gmra.mrb[28].mxu0 %v2841_v29  ;;  %1889 = vmatmul.mubr.f32.gmra.mrb[12].mxu1 %v2654_v37 }
 0x16f   : > { %1947 = vmatprep.mubr.f32.mxu0 %v2847_v30  ;;  %1891 = vmatprep.mubr.f32.mxu1 %v2659_v38 }
 0x172   : > { %1948 = vmatmul.mubr.f32.gmra.mrb[30].mxu0 %v2855_v31  ;;  %1892 = vmatmul.mubr.f32.gmra.mrb[14].mxu1 %v2666_v39 }
 0x173   : > { %1982 = vmatprep.mubr.f32.mxu1 %v2672_v40 }
 0x1a5   : > { %v427_v32 = vpop.permute.xlu1 %426 }
 0x1a6   : > { %474 = vst.msk [vmem:[#allocation2 + $0x8] sm:$0xff] %vm472_vm1, %v427_v32  ;;  %v425_v33 = vpop.permute.xlu0 %424 }
 0x1a7   : > { %473 = vst.msk [vmem:[#allocation2] sm:$0xff] %vm472_vm1, %v425_v33 }
 0x1aa   : > { %v431_v34 = vpop.permute.xlu0 %430 }
 0x1ab   : > { %476 = vst.msk [vmem:[#allocation2 + $0x18] sm:$0xff] %vm472_vm1, %v431_v34 }
 0x1ae   : > { %v429_v35 = vpop.permute.xlu0 %428 }
 0x1af   : > { %475 = vst.msk [vmem:[#allocation2 + $0x10] sm:$0xff] %vm472_vm1, %v429_v35 }
 0x1b2   : > { %v435_v36 = vpop.permute.xlu0 %434 }
 0x1b3   : > { %478 = vst.msk [vmem:[#allocation2 + $0x28] sm:$0xff] %vm472_vm1, %v435_v36 }
 0x1b6   : > { %v443_v37 = vpop.permute.xlu1 %442  ;;  %v433_v38 = vpop.permute.xlu0 %432 }
 0x1b7   : > { %482 = vst.msk [vmem:[#allocation2 + $0x48] sm:$0xff] %vm472_vm1, %v443_v37  ;;  %477 = vst.msk [vmem:[#allocation2 + $0x20] sm:$0xff] %vm472_vm1, %v433_v38 }
 0x1ba   : > { %v447_v39 = vpop.permute.xlu1 %446  ;;  %v439_v40 = vpop.permute.xlu0 %438 }
 0x1bb   : > { %484 = vst.msk [vmem:[#allocation2 + $0x58] sm:$0xff] %vm472_vm1, %v447_v39  ;;  %480 = vst.msk [vmem:[#allocation2 + $0x38] sm:$0xff] %vm472_vm1, %v439_v40 }
 0x1be   : > { %v445_v43 = vpop.permute.xlu1 %444  ;;  %v437_v46 = vpop.permute.xlu0 %436 }
 0x1bf   : > { %483 = vst.msk [vmem:[#allocation2 + $0x50] sm:$0xff] %vm472_vm1, %v445_v43  ;;  %479 = vst.msk [vmem:[#allocation2 + $0x30] sm:$0xff] %vm472_vm1, %v437_v46 }
 0x1c2   : > { %v451_v49 = vpop.permute.xlu1 %450  ;;  %v441_v52 = vpop.permute.xlu0 %440 }
 0x1c3   : > { %486 = vst.msk [vmem:[#allocation2 + $0x68] sm:$0xff] %vm472_vm1, %v451_v49  ;;  %481 = vst.msk [vmem:[#allocation2 + $0x40] sm:$0xff] %vm472_vm1, %v441_v52 }
 0x1c6   : > { %v449_v55 = vpop.permute.xlu1 %448 }
 0x1c7   : > { %485 = vst.msk [vmem:[#allocation2 + $0x60] sm:$0xff] %vm472_vm1, %v449_v55 }
 0x1ca   : > { %v455_v58 = vpop.permute.xlu1 %454 }
 0x1cb   : > { %488 = vst.msk [vmem:[#allocation2 + $0x78] sm:$0xff] %vm472_vm1, %v455_v58 }
 0x1ce   : > { %v453_v61 = vpop.permute.xlu1 %452 }
 0x1cf   : > { %487 = vst.msk [vmem:[#allocation2 + $0x70] sm:$0xff] %vm472_vm1, %v453_v61 }
 0x229   : > { %v1928_v3 = vpop.f32.mrb[16].mxu0  ;;  %v1872_v32 = vpop.f32.mrb[0].mxu1 }
 0x22a   : > { %927 = vrot.lane.b32.xlu0 %v1928_v3, %s2359_s30  ;;  %v830_v33 = vpop.f32.mrb[17].mxu0  ;;  %v635_v34 = vmul.f32 2.0, %v1872_v32  ;;  %v555_v35 = vpop.f32.mrb[1].mxu1 }
 0x22b   : > { %v2142_v36 = vpack.c.bf16 %v1928_v3, %v830_v33  ;;  %v634_v61 = vmul.f32 2.0, %v555_v35 }
 0x22c   : > { %v651_v39 = vsub.f32 %v635_v34, %v2484_v1 }
 0x22d   : > { %v1931_v37 = vpop.f32.mrb[18].mxu0  ;;  %2143 = vmatprep.subr.bf16.mxu1 %v2142_v36  ;;  %v1875_v38 = vpop.f32.mrb[2].mxu1 }
 0x22e   : > { %925 = vrot.lane.b32.xlu0 %v830_v33, %s2359_s30  ;;  %v840_v40 = vpop.f32.mrb[19].mxu0  ;;  %2145 = vmatpush3.bf16.msra.mxu1 %v2142_v36  ;;  %v565_v43 = vpop.f32.mrb[3].mxu1  ;;  %v650_v36 = vsub.f32 %v634_v61, %v2481_v0  ;;  %v637_v59 = vmul.f32 2.0, %v1875_v38 }
 0x22f   : > { %v2146_v46 = vpack.c.bf16 %v1931_v37, %v840_v40 }
 0x230   : > { %v653_v54 = vsub.f32 %v637_v59, %v2496_v4 }
 0x231   : > { %v1934_v49 = vpop.f32.mrb[20].mxu0  ;;  %2147 = vmatprep.subr.bf16.mxu1 %v2146_v46  ;;  %v2880_v52 = vpop.f32.mrb[4].mxu1 }
 0x232   : > { %v2882_v55 = vpop.f32.mrb[21].mxu0  ;;  %2149 = vmatpush3.bf16.msra.mxu1 %v2146_v46  ;;  %684 = vrot.lane.b32.xlu0 %v651_v39, %s2360_s5  ;;  %v2885_v58 = vpop.f32.mrb[5].mxu1 }
 0x233   : > { %v2150_v1 = vpack.c.bf16 %v1934_v49, %v2882_v55 }
 0x235   : > { %v2888_v3 = vpop.f32.mrb[22].mxu0  ;;  %2151 = vmatprep.subr.bf16.mxu1 %v2150_v1  ;;  %v2890_v32 = vpop.f32.mrb[6].mxu1 }
 0x236   : > { %v2892_v33 = vpop.f32.mrb[23].mxu0  ;;  %2153 = vmatpush3.bf16.msra.mxu1 %v2150_v1  ;;  %931 = vrot.lane.b32.xlu0 %v1931_v37, %s2359_s30  ;;  %v2895_v34 = vpop.f32.mrb[7].mxu1 }
 0x237   : > { %v2154_v39 = vpack.c.bf16 %v2888_v3, %v2892_v33 }
 0x239   : > { %v1940_v46 = vpop.f32.mrb[24].mxu0  ;;  %2155 = vmatprep.subr.bf16.mxu1 %v2154_v39  ;;  %v1884_v35 = vpop.f32.mrb[8].mxu1 }
 0x23a   : > { %943 = vrot.lane.b32.xlu1 %v1940_v46, %s2359_s30  ;;  %v870_v63 = vpop.f32.mrb[25].mxu0  ;;  %2157 = vmatpush3.bf16.msra.mxu1 %v2154_v39  ;;  %v643_v62 = vmul.f32 2.0, %v1884_v35  ;;  %v595_v60 = vpop.f32.mrb[9].mxu1 }
 0x23b   : > { %v2158_v1 = vpack.c.bf16 %v1940_v46, %v870_v63  ;;  %682 = vrot.lane.b32.xlu0 %v650_v36, %s2360_s5  ;;  %v642_v36 = vmul.f32 2.0, %v595_v60  ;;  %v639_v60 = vmul.f32 2.0, %v2880_v52 }
 0x23c   : > { %v659_v0 = vsub.f32 %v643_v62, %v2528_v11  ;;  %v636_v11 = vmul.f32 2.0, %v565_v43 }
 0x23d   : > { %v1943_v37 = vpop.f32.mrb[26].mxu0  ;;  %2159 = vmatprep.subr.bf16.mxu1 %v2158_v1  ;;  %v1887_v57 = vpop.f32.mrb[10].mxu1  ;;  %v658_v4 = vsub.f32 %v642_v36, %v2521_v10 }
 0x23e   : > { %941 = vrot.lane.b32.xlu1 %v870_v63, %s2359_s30  ;;  %v880_v61 = vpop.f32.mrb[27].mxu0  ;;  %2161 = vmatpush3.bf16.msra.mxu1 %v2158_v1  ;;  %v605_v56 = vpop.f32.mrb[11].mxu1 }
 0x23f   : > { %v2162_v53 = vpack.c.bf16 %v1943_v37, %v880_v61  ;;  %929 = vrot.lane.b32.xlu0 %v840_v40, %s2359_s30 }
 0x241   : > { %v1946_v39 = vpop.f32.mrb[28].mxu0  ;;  %2163 = vmatprep.subr.bf16.mxu1 %v2162_v53  ;;  %v1890_v38 = vpop.f32.mrb[12].mxu1 }
 0x242   : > { %v890_v46 = vpop.f32.mrb[29].mxu0  ;;  %2165 = vmatpush3.bf16.msra.mxu1 %v2162_v53  ;;  %700 = vrot.lane.b32.xlu1 %v659_v0, %s2360_s5  ;;  %v615_v35 = vpop.f32.mrb[13].mxu1  ;;  %v652_v53 = vsub.f32 %v636_v11, %v2487_v2  ;;  %v655_v2 = vsub.f32 %v639_v60, %v2504_v6  ;;  %v1268_v60 = vld [vmem:[#allocation3 + $0x20] sm:$0xff] }
 0x243   : > { %v2166_v62 = vpack.c.bf16 %v1946_v39, %v890_v46  ;;  %688 = vrot.lane.b32.xlu0 %v653_v54, %s2360_s5  ;;  %v645_v54 = vmul.f32 2.0, %v1887_v57  ;;  %v638_v57 = vmul.f32 2.0, %v2885_v58 }
 0x245   : > { %v1949_v63 = vpop.f32.mrb[30].mxu0  ;;  %2167 = vmatprep.subr.bf16.mxu1 %v2166_v62  ;;  %v1893_v1 = vpop.f32.mrb[14].mxu1  ;;  %v661_v10 = vsub.f32 %v645_v54, %v2536_v13  ;;  %v654_v6 = vsub.f32 %v638_v57, %v2501_v5  ;;  %v1271_v57 = vld [vmem:[#allocation3 + $0x38] sm:$0xf] }
 0x246   : > { %v900_v59 = vpop.f32.mrb[31].mxu0  ;;  %2169 = vmatpush3.bf16.msra.mxu1 %v2166_v62  ;;  %947 = vrot.lane.b32.xlu1 %v1943_v37, %s2359_s30  ;;  %v625_v40 = vpop.f32.mrb[15].mxu1 }
 0x247   : > { %v2170_v51 = vpack.c.bf16 %v1949_v63, %v900_v59  ;;  %935 = vrot.lane.b32.xlu0 %v1934_v49, %s2359_s30 }
 0x249   : > { %2171 = vmatprep.subr.bf16.mxu1 %v2170_v51 }
 0x24a   : > { %2173 = vmatpush3.bf16.msra.mxu1 %v2170_v51  ;;  %698 = vrot.lane.b32.xlu1 %v658_v4, %s2360_s5  ;;  %v644_v51 = vmul.f32 2.0, %v605_v56  ;;  %v647_v56 = vmul.f32 2.0, %v1890_v38  ;;  %v1265_v38 = vld [vmem:[#allocation3 + $0x8] sm:$0xff] }
 0x24b   : > { %686 = vrot.lane.b32.xlu0 %v652_v53, %s2360_s5  ;;  %v1267_v53 = vld [vmem:[#allocation3 + $0x18] sm:$0xff] }
 0x24c   : > { %v660_v13 = vsub.f32 %v644_v51, %v2533_v12  ;;  %v663_v12 = vsub.f32 %v647_v56, %v2548_v15  ;;  %v1270_v51 = vld [vmem:[#allocation3 + $0x30] sm:$0xff] }
 0x24d   : > { %1983 = vmatmul.mubr.f32.vlgmr.msra.gmra.mrb[16].mxu1 %v2752_v7  ;;  %v641_v7 = vmul.f32 2.0, %v2890_v32 }
 0x24e   : > { %945 = vrot.lane.b32.xlu1 %v880_v61, %s2359_s30  ;;  %1985 = vmatprep.mubr.f32.mxu1 %v2759_v17  ;;  %v640_v17 = vmul.f32 2.0, %v2895_v34 }
 0x24f   : > { %933 = vrot.lane.b32.xlu0 %v2882_v55, %s2359_s30  ;;  %v657_v5 = vsub.f32 %v641_v7, %v2518_v9 }
 0x250   : > { %v656_v15 = vsub.f32 %v640_v17, %v2515_v8  ;;  %v648_v8 = vmul.f32 2.0, %v625_v40  ;;  %v1266_v40 = vld [vmem:[#allocation3 + $0x10] sm:$0xff] }
 0x251   : > { %1986 = vmatmul.mubr.f32.gmra.mrb[18].mxu1 %v2767_v19  ;;  %v646_v19 = vmul.f32 2.0, %v615_v35  ;;  %v2178_v54 = vpack.c.bf16 %v1267_v53, %v1266_v40  ;;  %v3177_v40 = vld [vmem:[#allocation17_spill] sm:$0xff] }
 0x252   : > { %704 = vrot.lane.b32.xlu1 %v661_v10, %s2360_s5  ;;  %1988 = vmatprep.mubr.f32.mxu1 %v2775_v20  ;;  %v649_v20 = vmul.f32 2.0, %v1893_v1  ;;  %v1269_v10 = vld [vmem:[#allocation3 + $0x28] sm:$0xff] }
 0x253   : > { %692 = vrot.lane.b32.xlu0 %v655_v2, %s2360_s5  ;;  %v662_v9 = vsub.f32 %v646_v19, %v2545_v14  ;;  %v2182_v2 = vpack.c.bf16 %v1269_v10, %v1268_v60 }
 0x255   : > { %1989 = vmatmul.mubr.f32.gmra.mrb[20].mxu1 %v2783_v21  ;;  %v665_v21 = vsub.f32 %v649_v20, %v2560_v18 }
 0x256   : > { %951 = vrot.lane.b32.xlu1 %v1946_v39, %s2359_s30  ;;  %1991 = vmatprep.mubr.f32.mxu1 %v2791_v22  ;;  %v664_v22 = vsub.f32 %v648_v8, %v2551_v16  ;;  %v1264_v39 = vld [vmem:[#allocation3] sm:$0xff] }
 0x257   : > { %939 = vrot.lane.b32.xlu0 %v2888_v3, %s2359_s30 }
 0x259   : > { %1992 = vmatmul.mubr.f32.gmra.mrb[22].mxu1 %v2799_v23 }
 0x25a   : > { %702 = vrot.lane.b32.xlu1 %v660_v13, %s2360_s5  ;;  %1994 = vmatprep.mubr.f32.mxu1 %v2805_v24 }
 0x25b   : > { %690 = vrot.lane.b32.xlu0 %v654_v6, %s2360_s5  ;;  %v2186_v6 = vpack.c.bf16 %v1271_v57, %v1270_v51 }
 0x25d   : > { %1995 = vmatmul.mubr.f32.gmra.mrb[24].mxu1 %v2813_v25 }
 0x25e   : > { %949 = vrot.lane.b32.xlu1 %v890_v46, %s2359_s30  ;;  %1997 = vmatprep.mubr.f32.mxu1 %v2819_v26  ;;  %v2174_v46 = vpack.c.bf16 %v1265_v38, %v1264_v39  ;;  %v3174_v38 = vld [vmem:[#allocation14_spill] sm:$0xff] }
 0x25f   : > { %937 = vrot.lane.b32.xlu0 %v2892_v33, %s2359_s30 }
 0x260   : > { %2175 = vmatprep.subr.bf16.mxu0 %v2174_v46  ;;  %2192 = vmatprep.subr.bf16.mxu1 %v2174_v46 }
 0x261   : > { %1998 = vmatmul.mubr.f32.gmra.mrb[26].mxu1 %v2827_v27  ;;  %2177 = vmatpush3.bf16.msra.mxu0 %v2174_v46 }
 0x262   : > { %708 = vrot.lane.b32.xlu1 %v663_v12, %s2360_s5  ;;  %2000 = vmatprep.mubr.f32.mxu1 %v2833_v28 }
 0x263   : > { %696 = vrot.lane.b32.xlu0 %v657_v5, %s2360_s5  ;;  %2196 = vmatpush3.bf16.msra.mxu1 %v2174_v46 }
 0x264   : > { %2179 = vmatprep.subr.bf16.mxu0 %v2178_v54  ;;  %2193 = vmatprep.subr.bf16.mxu1 %v2178_v54 }
 0x265   : > { %2001 = vmatmul.mubr.f32.gmra.mrb[28].mxu1 %v2841_v29  ;;  %2181 = vmatpush3.bf16.msra.mxu0 %v2178_v54 }
 0x266   : > { %955 = vrot.lane.b32.xlu1 %v1949_v63, %s2359_s30  ;;  %2003 = vmatprep.mubr.f32.mxu1 %v2847_v30 }
 0x267   : > { %694 = vrot.lane.b32.xlu0 %v656_v15, %s2360_s5  ;;  %2197 = vmatpush3.bf16.msra.mxu1 %v2178_v54 }
 0x268   : > { %2183 = vmatprep.subr.bf16.mxu0 %v2182_v2  ;;  %2194 = vmatprep.subr.bf16.mxu1 %v2182_v2 }
 0x269   : > { %2004 = vmatmul.mubr.f32.gmra.mrb[30].mxu1 %v2855_v31  ;;  %2185 = vmatpush3.bf16.msra.mxu0 %v2182_v2 }
 0x26a   : > { %706 = vrot.lane.b32.xlu1 %v662_v9, %s2360_s5  ;;  %2188 = vmatprep.subr.msk.bf16.mxu0 %vm2187_vm6, %v2186_v6 }
 0x26b   : > { %2198 = vmatpush3.bf16.msra.mxu1 %v2182_v2 }
 0x26c   : > { %2195 = vmatprep.subr.msk.bf16.mxu1 %vm2187_vm6, %v2186_v6 }
 0x26d   : > { %2191 = vmatpush3.bf16.msk.msra.mxu0 %vm2187_vm6, %v2186_v6 }
 0x26e   : > { %953 = vrot.lane.b32.xlu1 %v900_v59, %s2359_s30 }
 0x26f   : > { %2199 = vmatpush3.bf16.msk.msra.mxu1 %vm2187_vm6, %v2186_v6 }
 0x272   : > { %712 = vrot.lane.b32.xlu1 %v665_v21, %s2360_s5 }
 0x276   : > { %710 = vrot.lane.b32.xlu1 %v664_v22, %s2360_s5 }
 0x29c   : > { %v928_v14 = vpop.permute.xlu0 %927 }
 0x2a0   : > { %v926_v23 = vpop.permute.xlu0 %925 }
 0x2a4   : > { %v685_v24 = vpop.permute.xlu0 %684 }
 0x2a5   : > { %732 = vst.msk [vmem:[#allocation2 + $0x8] sm:$0xff] %vm730_vm2, %v685_v24 }
 0x2a6   : > { %975 = vst.msk [vmem:[#allocation2 + $0x8] sm:$0xff] %vm973_vm3, %v928_v14 }
 0x2a8   : > { %v932_v25 = vpop.permute.xlu0 %931 }
 0x2ac   : > { %v944_v18 = vpop.permute.xlu1 %943 }
 0x2ad   : > { %v683_v26 = vpop.permute.xlu0 %682 }
 0x2ae   : > { %731 = vst.msk [vmem:[#allocation2] sm:$0xff] %vm730_vm2, %v683_v26 }
 0x2af   : > { %974 = vst.msk [vmem:[#allocation2] sm:$0xff] %vm973_vm3, %v926_v23 }
 0x2b0   : > { %v942_v16 = vpop.permute.xlu1 %941 }
 0x2b1   : > { %v930_v27 = vpop.permute.xlu0 %929 }
 0x2b4   : > { %v701_v28 = vpop.permute.xlu1 %700 }
 0x2b5   : > { %v689_v29 = vpop.permute.xlu0 %688  ;;  %740 = vst.msk [vmem:[#allocation2 + $0x48] sm:$0xff] %vm730_vm2, %v701_v28 }
 0x2b6   : > { %734 = vst.msk [vmem:[#allocation2 + $0x18] sm:$0xff] %vm730_vm2, %v689_v29 }
 0x2b7   : > { %983 = vst.msk [vmem:[#allocation2 + $0x48] sm:$0xff] %vm973_vm3, %v944_v18  ;;  %977 = vst.msk [vmem:[#allocation2 + $0x18] sm:$0xff] %vm973_vm3, %v932_v25 }
 0x2b8   : > { %v948_v30 = vpop.permute.xlu1 %947 }
 0x2b9   : > { %v936_v31 = vpop.permute.xlu0 %935 }
 0x2bc   : > { %v699_v43 = vpop.permute.xlu1 %698 }
 0x2bd   : > { %v687_v49 = vpop.permute.xlu0 %686  ;;  %739 = vst.msk [vmem:[#allocation2 + $0x40] sm:$0xff] %vm730_vm2, %v699_v43  ;;  %v3170_v43 = vld [vmem:[#allocation10_spill] sm:$0xff] }
 0x2be   : > { %733 = vst.msk [vmem:[#allocation2 + $0x10] sm:$0xff] %vm730_vm2, %v687_v49  ;;  %v3171_v49 = vld [vmem:[#allocation11_spill] sm:$0xff] }
 0x2bf   : > { %982 = vst.msk [vmem:[#allocation2 + $0x40] sm:$0xff] %vm973_vm3, %v942_v16  ;;  %976 = vst.msk [vmem:[#allocation2 + $0x10] sm:$0xff] %vm973_vm3, %v930_v27  ;;  %v3169_v27 = vld [vmem:[#allocation9_spill] sm:$0xff] }
 0x2c0   : > { %v946_v52 = vpop.permute.xlu1 %945 }
 0x2c1   : > { %v934_v55 = vpop.permute.xlu0 %933 }
 0x2c4   : > { %v705_v58 = vpop.permute.xlu1 %704 }
 0x2c5   : > { %v693_v3 = vpop.permute.xlu0 %692  ;;  %742 = vst.msk [vmem:[#allocation2 + $0x58] sm:$0xff] %vm730_vm2, %v705_v58 }
 0x2c6   : > { %736 = vst.msk [vmem:[#allocation2 + $0x28] sm:$0xff] %vm730_vm2, %v693_v3  ;;  %v3172_v3 = vld [vmem:[#allocation12_spill] sm:$0xff] }
 0x2c7   : > { %985 = vst.msk [vmem:[#allocation2 + $0x58] sm:$0xff] %vm973_vm3, %v948_v30  ;;  %979 = vst.msk [vmem:[#allocation2 + $0x28] sm:$0xff] %vm973_vm3, %v936_v31 }
 0x2c8   : > { %v952_v32 = vpop.permute.xlu1 %951 }
 0x2c9   : > { %v940_v33 = vpop.permute.xlu0 %939 }
 0x2cc   : > { %v703_v34 = vpop.permute.xlu1 %702 }
 0x2cd   : > { %v691_v37 = vpop.permute.xlu0 %690  ;;  %741 = vst.msk [vmem:[#allocation2 + $0x50] sm:$0xff] %vm730_vm2, %v703_v34 }
 0x2ce   : > { %735 = vst.msk [vmem:[#allocation2 + $0x20] sm:$0xff] %vm730_vm2, %v691_v37 }
 0x2cf   : > { %984 = vst.msk [vmem:[#allocation2 + $0x50] sm:$0xff] %vm973_vm3, %v946_v52  ;;  %978 = vst.msk [vmem:[#allocation2 + $0x20] sm:$0xff] %vm973_vm3, %v934_v55 }
 0x2d0   : > { %v950_v0 = vpop.permute.xlu1 %949 }
 0x2d1   : > { %v938_v61 = vpop.permute.xlu0 %937 }
 0x2d4   : > { %v709_v36 = vpop.permute.xlu1 %708 }
 0x2d5   : > { %v697_v35 = vpop.permute.xlu0 %696  ;;  %744 = vst.msk [vmem:[#allocation2 + $0x68] sm:$0xff] %vm730_vm2, %v709_v36  ;;  %v3175_v36 = vld [vmem:[#allocation15_spill] sm:$0xff] }
 0x2d6   : > { %738 = vst.msk [vmem:[#allocation2 + $0x38] sm:$0xff] %vm730_vm2, %v697_v35 }
 0x2d7   : > { %987 = vst.msk [vmem:[#allocation2 + $0x68] sm:$0xff] %vm973_vm3, %v952_v32  ;;  %981 = vst.msk [vmem:[#allocation2 + $0x38] sm:$0xff] %vm973_vm3, %v940_v33  ;;  %v3173_v33 = vld [vmem:[#allocation13_spill] sm:$0xff] }
 0x2d8   : > { %v956_v11 = vpop.permute.xlu1 %955 }
 0x2d9   : > { %v695_v62 = vpop.permute.xlu0 %694 }
 0x2da   : > { %737 = vst.msk [vmem:[#allocation2 + $0x30] sm:$0xff] %vm730_vm2, %v695_v62 }
 0x2db   : > { %980 = vst.msk [vmem:[#allocation2 + $0x30] sm:$0xff] %vm973_vm3, %v938_v61 }
 0x2dc   : > { %v707_v63 = vpop.permute.xlu1 %706 }
 0x2dd   : > { %743 = vst.msk [vmem:[#allocation2 + $0x60] sm:$0xff] %vm730_vm2, %v707_v63 }
 0x2de   : > { %986 = vst.msk [vmem:[#allocation2 + $0x60] sm:$0xff] %vm973_vm3, %v950_v0 }
 0x2e0   : > { %v954_v1 = vpop.permute.xlu1 %953 }
 0x2e4   : > { %v713_v4 = vpop.permute.xlu1 %712 }
 0x2e5   : > { %746 = vst.msk [vmem:[#allocation2 + $0x78] sm:$0xff] %vm730_vm2, %v713_v4  ;;  %v3176_v4 = vld [vmem:[#allocation16_spill] sm:$0xff] }
 0x2e6   : > { %989 = vst.msk [vmem:[#allocation2 + $0x78] sm:$0xff] %vm973_vm3, %v956_v11 }
 0x2e8   : > { %v711_v59 = vpop.permute.xlu1 %710 }
 0x2e9   : > { %745 = vst.msk [vmem:[#allocation2 + $0x70] sm:$0xff] %vm730_vm2, %v711_v59 }
 0x2ea   : > { %988 = vst.msk [vmem:[#allocation2 + $0x70] sm:$0xff] %vm973_vm3, %v954_v1 }
 0x320   : > { %v1984_v13 = vpop.f32.mrb[16].mxu1 }
 0x321   : > { %v1136_v56 = vmul.f32 2.0, %v1984_v13  ;;  %v1056_v7 = vpop.f32.mrb[17].mxu1 }
 0x322   : > { %v1135_v12 = vmul.f32 2.0, %v1056_v7 }
 0x323   : > { %v1152_v5 = vsub.f32 %v1136_v56, %v2675_v41 }
 0x324   : > { %v1151_v17 = vsub.f32 %v1135_v12, %v2679_v42  ;;  %v1987_v19 = vpop.f32.mrb[18].mxu1 }
 0x325   : > { %v1138_v15 = vmul.f32 2.0, %v1987_v19  ;;  %1185 = vrot.lane.b32.xlu0 %v1152_v5, %s2362_s6  ;;  %v1066_v9 = vpop.f32.mrb[19].mxu1 }
 0x326   : > { %v1137_v20 = vmul.f32 2.0, %v1066_v9 }
 0x327   : > { %v1154_v21 = vsub.f32 %v1138_v15, %v2685_v44 }
 0x328   : > { %v1153_v8 = vsub.f32 %v1137_v20, %v2687_v45  ;;  %v1990_v22 = vpop.f32.mrb[20].mxu1 }
 0x329   : > { %v1140_v14 = vmul.f32 2.0, %v1990_v22  ;;  %1183 = vrot.lane.b32.xlu0 %v1151_v17, %s2362_s6  ;;  %v1076_v41 = vpop.f32.mrb[21].mxu1 }
 0x32a   : > { %v1139_v23 = vmul.f32 2.0, %v1076_v41 }
 0x32b   : > { %v1156_v24 = vsub.f32 %v1140_v14, %v2693_v47 }
 0x32c   : > { %v1155_v42 = vsub.f32 %v1139_v23, %v2695_v48  ;;  %v1993_v25 = vpop.f32.mrb[22].mxu1 }
 0x32d   : > { %v1142_v18 = vmul.f32 2.0, %v1993_v25  ;;  %1189 = vrot.lane.b32.xlu0 %v1154_v21, %s2362_s6  ;;  %v1086_v26 = vpop.f32.mrb[23].mxu1 }
 0x32e   : > { %v1141_v16 = vmul.f32 2.0, %v1086_v26 }
 0x32f   : > { %v1158_v44 = vsub.f32 %v1142_v18, %v2701_v50 }
 0x330   : > { %v1157_v45 = vsub.f32 %v1141_v16, %v3169_v27  ;;  %v1996_v28 = vpop.f32.mrb[24].mxu1 }
 0x331   : > { %v1144_v29 = vmul.f32 2.0, %v1996_v28  ;;  %1187 = vrot.lane.b32.xlu0 %v1153_v8, %s2362_s6  ;;  %v1096_v30 = vpop.f32.mrb[25].mxu1  ;;  %v1606_v28 = vld [vmem:[%s3139_s3] ss:$0 sm:$0xff] }
 0x332   : > { %v1143_v31 = vmul.f32 2.0, %v1096_v30 }
 0x333   : > { %v1160_v47 = vsub.f32 %v1144_v29, %v3170_v43 }
 0x334   : > { %v1159_v48 = vsub.f32 %v1143_v31, %v3171_v49  ;;  %v1999_v52 = vpop.f32.mrb[26].mxu1 }
 0x335   : > { %v1146_v55 = vmul.f32 2.0, %v1999_v52  ;;  %1193 = vrot.lane.b32.xlu0 %v1156_v24, %s2362_s6  ;;  %v1106_v58 = vpop.f32.mrb[27].mxu1  ;;  %1201 = vrot.lane.b32.xlu1 %v1160_v47, %s2362_s6 }
 0x336   : > { %v1145_v50 = vmul.f32 2.0, %v1106_v58 }
 0x337   : > { %v1162_v32 = vsub.f32 %v1146_v55, %v3172_v3 }
 0x338   : > { %v1161_v34 = vsub.f32 %v1145_v50, %v3173_v33  ;;  %v2002_v37 = vpop.f32.mrb[28].mxu1 }
 0x339   : > { %v1148_v0 = vmul.f32 2.0, %v2002_v37  ;;  %1191 = vrot.lane.b32.xlu0 %v1155_v42, %s2362_s6  ;;  %v1116_v61 = vpop.f32.mrb[29].mxu1  ;;  %1199 = vrot.lane.b32.xlu1 %v1159_v48, %s2362_s6 }
 0x33a   : > { %v1147_v39 = vmul.f32 2.0, %v1116_v61 }
 0x33b   : > { %v1164_v46 = vsub.f32 %v1148_v0, %v3174_v38 }
 0x33c   : > { %v1163_v35 = vsub.f32 %v1147_v39, %v3175_v36  ;;  %v2005_v11 = vpop.f32.mrb[30].mxu1 }
 0x33d   : > { %v1150_v62 = vmul.f32 2.0, %v2005_v11  ;;  %1195 = vrot.lane.b32.xlu0 %v1157_v45, %s2362_s6  ;;  %v1126_v63 = vpop.f32.mrb[31].mxu1  ;;  %1205 = vrot.lane.b32.xlu1 %v1162_v32, %s2362_s6 }
 0x33e   : > { %v1149_v1 = vmul.f32 2.0, %v1126_v63 }
 0x33f   : > { %v1166_v59 = vsub.f32 %v1150_v62, %v3176_v4 }
 0x340   : > { %v1165_v53 = vsub.f32 %v1149_v1, %v3177_v40 }
 0x341   : > { %1197 = vrot.lane.b32.xlu0 %v1158_v44, %s2362_s6  ;;  %1203 = vrot.lane.b32.xlu1 %v1161_v34, %s2362_s6 }
 0x345   : > { %1209 = vrot.lane.b32.xlu1 %v1164_v46, %s2362_s6 }
 0x349   : > { %1207 = vrot.lane.b32.xlu1 %v1163_v35, %s2362_s6 }
 0x34d   : > { %1211 = vrot.lane.b32.xlu1 %v1165_v53, %s2362_s6 }
 0x351   : > { %1213 = vrot.lane.b32.xlu1 %v1166_v59, %s2362_s6 }
 0x397   : > { %v1186_v54 = vpop.permute.xlu0 %1185 }
 0x398   : > { %1233 = vst.msk [vmem:[#allocation2 + $0x8] sm:$0xff] %vm1231_vm7, %v1186_v54 }
 0x39b   : > { %v1184_v60 = vpop.permute.xlu0 %1183 }
 0x39c   : > { %1232 = vst.msk [vmem:[#allocation2] sm:$0xff] %vm1231_vm7, %v1184_v60 }
 0x39f   : > { %v1190_v10 = vpop.permute.xlu0 %1189  ;;  %v1249_v57 = vld [vmem:[#allocation2 + $0x8] sm:$0xff] }
 0x3a0   : > { %1235 = vst.msk [vmem:[#allocation2 + $0x18] sm:$0xff] %vm1231_vm7, %v1190_v10 }
 0x3a3   : > { %v1188_v2 = vpop.permute.xlu0 %1187  ;;  %v1248_v51 = vld [vmem:[#allocation2] sm:$0xff] }
 0x3a4   : > { %1234 = vst.msk [vmem:[#allocation2 + $0x10] sm:$0xff] %vm1231_vm7, %v1188_v2  ;;  %2022 = vmatprep.mubr.msk.f32.mxu0 %vm1279_vm8, %v1248_v51 }
 0x3a5   : > { %2023 = vmatmul.mubr.msk.f32.vlgmr.msra.gmra.mrb[32].mxu0 %vm1279_vm8, %v1249_v57 }
 0x3a7   : > { %v1194_v13 = vpop.permute.xlu0 %1193  ;;  %v1202_v6 = vpop.permute.xlu1 %1201  ;;  %v1251_v5 = vld [vmem:[#allocation2 + $0x18] sm:$0xff] }
 0x3a8   : > { %1237 = vst.msk [vmem:[#allocation2 + $0x28] sm:$0xff] %vm1231_vm7, %v1194_v13  ;;  %1241 = vst.msk [vmem:[#allocation2 + $0x48] sm:$0xff] %vm1231_vm7, %v1202_v6 }
 0x3ab   : > { %v1192_v56 = vpop.permute.xlu0 %1191  ;;  %v1200_v7 = vpop.permute.xlu1 %1199  ;;  %v1250_v12 = vld [vmem:[#allocation2 + $0x10] sm:$0xff] }
 0x3ac   : > { %1236 = vst.msk [vmem:[#allocation2 + $0x20] sm:$0xff] %vm1231_vm7, %v1192_v56  ;;  %1240 = vst.msk [vmem:[#allocation2 + $0x40] sm:$0xff] %vm1231_vm7, %v1200_v7  ;;  %2025 = vmatprep.mubr.msk.f32.mxu0 %vm1279_vm8, %v1250_v12 }
 0x3ad   : > { %2026 = vmatmul.mubr.msk.f32.gmra.mrb[34].mxu0 %vm1279_vm8, %v1251_v5 }
 0x3af   : > { %v1196_v17 = vpop.permute.xlu0 %1195  ;;  %v1206_v19 = vpop.permute.xlu1 %1205  ;;  %v1253_v8 = vld [vmem:[#allocation2 + $0x28] sm:$0xff] }
 0x3b0   : > { %1238 = vst.msk [vmem:[#allocation2 + $0x30] sm:$0xff] %vm1231_vm7, %v1196_v17  ;;  %1243 = vst.msk [vmem:[#allocation2 + $0x58] sm:$0xff] %vm1231_vm7, %v1206_v19  ;;  %v1257_v22 = vld [vmem:[#allocation2 + $0x48] sm:$0xff] }
 0x3b3   : > { %v1198_v15 = vpop.permute.xlu0 %1197  ;;  %v1204_v9 = vpop.permute.xlu1 %1203  ;;  %v1252_v20 = vld [vmem:[#allocation2 + $0x20] sm:$0xff] }
 0x3b4   : > { %v1256_v21 = vld [vmem:[#allocation2 + $0x40] sm:$0xff]  ;;  %1239 = vst.msk [vmem:[#allocation2 + $0x38] sm:$0xff] %vm1231_vm7, %v1198_v15  ;;  %1242 = vst.msk [vmem:[#allocation2 + $0x50] sm:$0xff] %vm1231_vm7, %v1204_v9  ;;  %2028 = vmatprep.mubr.msk.f32.mxu0 %vm1279_vm8, %v1252_v20 }
 0x3b5   : > { %2034 = vmatprep.mubr.msk.f32.mxu1 %vm1279_vm8, %v1256_v21  ;;  %2029 = vmatmul.mubr.msk.f32.gmra.mrb[36].mxu0 %vm1279_vm8, %v1253_v8 }
 0x3b6   : > { %2035 = vmatmul.mubr.msk.f32.vlgmr.msra.gmra.mrb[32].mxu1 %vm1279_vm8, %v1257_v22 }
 0x3b7   : > { %v1210_v14 = vpop.permute.xlu1 %1209  ;;  %v1254_v41 = vld [vmem:[#allocation2 + $0x30] sm:$0xff]  ;;  %v1259_v25 = vld [vmem:[#allocation2 + $0x58] sm:$0xff] }
 0x3b8   : > { %1245 = vst.msk [vmem:[#allocation2 + $0x68] sm:$0xff] %vm1231_vm7, %v1210_v14  ;;  %2031 = vmatprep.mubr.msk.f32.mxu0 %vm1279_vm8, %v1254_v41 }
 0x3bb   : > { %v1208_v23 = vpop.permute.xlu1 %1207  ;;  %v1255_v24 = vld [vmem:[#allocation2 + $0x38] sm:$0xff]  ;;  %v1258_v42 = vld [vmem:[#allocation2 + $0x50] sm:$0xff] }
 0x3bc   : > { %1244 = vst.msk [vmem:[#allocation2 + $0x60] sm:$0xff] %vm1231_vm7, %v1208_v23  ;;  %2032 = vmatmul.mubr.msk.f32.gmra.mrb[38].mxu0 %vm1279_vm8, %v1255_v24  ;;  %2037 = vmatprep.mubr.msk.f32.mxu1 %vm1279_vm8, %v1258_v42 }
 0x3bd   : > { %2038 = vmatmul.mubr.msk.f32.gmra.mrb[34].mxu1 %vm1279_vm8, %v1259_v25 }
 0x3bf   : > { %v1212_v18 = vpop.permute.xlu1 %1211  ;;  %v1261_v44 = vld [vmem:[#allocation2 + $0x68] sm:$0xff] }
 0x3c0   : > { %1246 = vst.msk [vmem:[#allocation2 + $0x70] sm:$0xff] %vm1231_vm7, %v1212_v18 }
 0x3c3   : > { %v1214_v26 = vpop.permute.xlu1 %1213  ;;  %v1260_v16 = vld [vmem:[#allocation2 + $0x60] sm:$0xff] }
 0x3c4   : > { %1247 = vst.msk [vmem:[#allocation2 + $0x78] sm:$0xff] %vm1231_vm7, %v1214_v26  ;;  %2040 = vmatprep.mubr.msk.f32.mxu1 %vm1279_vm8, %v1260_v16 }
 0x3c5   : > { %2041 = vmatmul.mubr.msk.f32.gmra.mrb[36].mxu1 %vm1279_vm8, %v1261_v44 }
 0x3c7   : > { %v1262_v27 = vld [vmem:[#allocation2 + $0x70] sm:$0xff] }
 0x3c8   : > { %2043 = vmatprep.mubr.msk.f32.mxu1 %vm1279_vm8, %v1262_v27 }
 0x3cb   : > { %v1263_v45 = vld [vmem:[#allocation2 + $0x78] sm:$0xff] }
 0x3cc   : > { %2044 = vmatmul.mubr.msk.f32.gmra.mrb[38].mxu1 %vm1279_vm8, %v1263_v45 }
 0x478   : > { %v2024_v29 = vpop.f32.mrb[32].mxu0 }
 0x479   : > { %v1404_v30 = vadd.f32 %v2024_v29, %v1606_v28  ;;  %v1398_v31 = vpop.f32.mrb[33].mxu0 }
 0x47a   : > { %v1399_v43 = vadd.f32 %v1606_v28, %v1398_v31 }
 0x47b   : > { %1478 = vst [vmem:[%s3066_s9 + $0x8] sm:$0xff] %v1404_v30 }
 0x47c   : > { %1477 = vst [vmem:[%s3066_s9] sm:$0xff] %v1399_v43 }
 0x480   : > { %v2027_v47 = vpop.f32.mrb[34].mxu0 }
 0x481   : > { %v1414_v49 = vadd.f32 %v2027_v47, %v1606_v28  ;;  %v1408_v48 = vpop.f32.mrb[35].mxu0 }
 0x482   : > { %v1409_v52 = vadd.f32 %v1606_v28, %v1408_v48 }
 0x483   : > { %1480 = vst [vmem:[%s3066_s9 + $0x18] sm:$0xff] %v1414_v49 }
 0x484   : > { %1479 = vst [vmem:[%s3066_s9 + $0x10] sm:$0xff] %v1409_v52 }
 0x488   : > { %v2030_v55 = vpop.f32.mrb[36].mxu0 }
 0x489   : > { %v2036_v58 = vpop.f32.mrb[32].mxu1  ;;  %v1424_v50 = vadd.f32 %v2030_v55, %v1606_v28  ;;  %v1418_v32 = vpop.f32.mrb[37].mxu0 }
 0x48a   : > { %v1444_v3 = vadd.f32 %v2036_v58, %v1606_v28  ;;  %v1438_v33 = vpop.f32.mrb[33].mxu1  ;;  %v1419_v34 = vadd.f32 %v1606_v28, %v1418_v32 }
 0x48b   : > { %v1439_v37 = vadd.f32 %v1606_v28, %v1438_v33  ;;  %1482 = vst [vmem:[%s3066_s9 + $0x28] sm:$0xff] %v1424_v50 }
 0x48c   : > { %1486 = vst [vmem:[%s3066_s9 + $0x48] sm:$0xff] %v1444_v3  ;;  %1481 = vst [vmem:[%s3066_s9 + $0x20] sm:$0xff] %v1419_v34 }
 0x48d   : > { %1485 = vst [vmem:[%s3066_s9 + $0x40] sm:$0xff] %v1439_v37 }
 0x48f   : > { %v2033_v0 = vpop.f32.mrb[38].mxu0 }
 0x490   : > { %v1434_v61 = vadd.f32 %v2033_v0, %v1606_v28  ;;  %v1428_v39 = vpop.f32.mrb[39].mxu0  ;;  %v2039_v38 = vpop.f32.mrb[34].mxu1 }
 0x491   : > { %v1429_v46 = vadd.f32 %v1606_v28, %v1428_v39  ;;  %v1454_v36 = vadd.f32 %v2039_v38, %v1606_v28  ;;  %v1448_v35 = vpop.f32.mrb[35].mxu1 }
 0x492   : > { %1484 = vst [vmem:[%s3066_s9 + $0x38] sm:$0xff] %v1434_v61  ;;  %v1449_v11 = vadd.f32 %v1606_v28, %v1448_v35 }
 0x493   : > { %1483 = vst [vmem:[%s3066_s9 + $0x30] sm:$0xff] %v1429_v46  ;;  %1488 = vst [vmem:[%s3066_s9 + $0x58] sm:$0xff] %v1454_v36 }
 0x494   : > { %1487 = vst [vmem:[%s3066_s9 + $0x50] sm:$0xff] %v1449_v11 }
 0x498   : > { %v2042_v62 = vpop.f32.mrb[36].mxu1 }
 0x499   : > { %v1464_v63 = vadd.f32 %v2042_v62, %v1606_v28  ;;  %v1458_v1 = vpop.f32.mrb[37].mxu1 }
 0x49a   : > { %v1459_v4 = vadd.f32 %v1606_v28, %v1458_v1 }
 0x49b   : > { %1490 = vst [vmem:[%s3066_s9 + $0x68] sm:$0xff] %v1464_v63 }
 0x49c   : > { %1489 = vst [vmem:[%s3066_s9 + $0x60] sm:$0xff] %v1459_v4 }
 0x49f   : > { %v2045_v59 = vpop.f32.mrb[38].mxu1 }
 0x4a0   : > { %v1474_v40 = vadd.f32 %v2045_v59, %v1606_v28  ;;  %v1468_v53 = vpop.f32.mrb[39].mxu1 }
 0x4a1   : > { %v1469_v54 = vadd.f32 %v1606_v28, %v1468_v53 }
 0x4a2   : > { %1492 = vst [vmem:[%s3066_s9 + $0x78] sm:$0xff] %v1474_v40 }
 0x4a3   : > { %1491 = vst [vmem:[%s3066_s9 + $0x70] sm:$0xff] %v1469_v54 }
 0x4a4   : > { %2300 = shalt.err (!%p2297_p7)
}
 0x4a5   : > { %s2301_s30 = scalar_lea.hbm %s3087_s14, 2048  ;;  %s2305_s27 = scalar_lea.hbm %s3140_s4, 4096 }
 0x4a6   : > { %p2302_p8 = scmp.ne.s32.totalorder %s3087_s14, %s2301_s30  ;;  %p2306_p1 = scmp.lt.u32.totalorder %s3087_s14, %s3140_s4 }
 0x4a7   : > { %p2307_p0 = scmp.lt.u32.totalorder %s2305_s27, %s2301_s30  ;;  %p2309_p6 = scmp.lt.u32.totalorder %s2301_s30, %s3087_s14 }
 0x4a8   : > { %p2303_p11 = pnand %p2302_p8, %p3178_p9 }
 0x4a9   : > { %p2308_p5 = por %p2307_p0, %p2306_p1 }
 0x4aa   : > { %p2304_p13 = pneg %p2303_p11 }
 0x4ab   : > { %p2310_p10 = por %p2309_p6, %p2308_p5 }
 0x4ad   : > { %p2311_p12 = pnand %p2310_p10, %p2304_p13 }
 0x4af   : > { %2314 = shalt.err (!%p2311_p12)
}
 0x4b0   : > { %s2364_s8 = smov 128   ;;  %s2365_s9 = smov 8  }
 0x4b1   : > { %2204 = dma.vmem_to_hbm [thread:$0]  (%p3178_p9), %s3089_s11, 2048, %s3087_s14, %s3095_s20, %s2364_s8, %s2364_s8, %s2365_s9  }
 0x4b2 PF: > { %p2216_p2 = scmp.ge.s32.totalorder %s2353_s18, 2  ;;  %s1522_s10 = sand.u32 1, %s2341_s15  }
 0x4b3   : > { %p3179_p3 = scmp.ne.s32.totalorder %s3154_s26, 0  ;;  %s1523_s12 = scalar_lea.sflag [#allocation5], %s1522_s10 }
 0x4b5   : > { %p2211_p4 = pnand %p2216_p2, %p3179_p3 }
 0x4b7   : > { %2336 = dma.done.wait (!%p2211_p4), %s1523_s12, 2048  }
 0x4b8   : > { %2338 = vsyncadd (!%p2211_p4), %s1523_s12, 4294965248  ;;  %p15_p7 = scmp.ge.s32.totalorder %s2416_s21, 4   ;;  %s3180_s15 = smov %s2345_s16 }
 0x4b9   : > { %s3181_s16 = smov %s2349_s17  ;;  %s3182_s17 = smov %s2427_s24 }
 0x4ba   : > { %s3183_s18 = smov %s2416_s21  ;;  %17 = sbr.rel (!%p15_p7) target bundleno = 4 (0x4), region = 77 }
 0x4c1   :  { %1528 = vsyncpa [#allocation4], 1 }
 0x4c2   :  { %1530 = vsyncpa [#allocation4 + $0x1], 1 }
 0x4c3   :  { %1531 = vsyncpa [#allocation5], 1 }
 0x4c4   :  { %1533 = vsyncpa [#allocation5 + $0x1], 1 }

// kernel: tpu_custom_call.1
= control target key start
LH: loop header
LB: loop body
LE: loop exit
PB: predicated region body
PF: predicated region fallthrough
CT: control target
= control target key end

     0   :  { %9 = vsyncpa [#allocation4], 0  ;;  %s3136_s0 = inlined_call_operand.vmem [shape: f32[2,128,128], index: 0, kind: input, shape index: {}]   ;;  %s3137_s1 = inlined_call_operand.vmem [shape: f32[256,12], index: 1, kind: input, shape index: {}]   ;;  %s3138_s2 = inlined_call_operand.hbm [shape: f32[60,128], index: 2, kind: input, shape index: {}]   ;;  %s3139_s3 = inlined_call_operand.vmem [shape: f32[1,128], index: 3, kind: input, shape index: {}]   ;;  %s3140_s4 = inlined_call_operand.hbm [shape: f32[256,128], index: 4, kind: output, shape index: {}]  }
   0x1   :  { %10 = vsyncpa [#allocation5], 0 }
   0x2   :  { %12 = vsyncpa [#allocation5 + $0x1], 0  ;;  %s2391_s15 = smov 0   ;;  %s2393_s16 = smov 0  }
   0x3   :  { %s2395_s17 = smov 0   ;;  %s2397_s18 = smov 0  }
   0x4 LB: > { %s2412_s19 = sadd.s32 4294967295, %s2353_s18   ;;  %s1581_s20 = sadd.s32 4294967294, %s2353_s18   ;;  %s2353_s18 = sphi %s2397_s18, %s3183_s18   ;;  %s2349_s17 = sphi %s2395_s17, %s3182_s17   ;;  %s2345_s16 = sphi %s2393_s16, %s3181_s16   ;;  %s2341_s15 = sphi %s2391_s15, %s3180_s15  }
   0x5   : > { %s2416_s21 = sadd.s32 1, %s2353_s18   ;;  %s114_s22 = sadd.s32 1, %s2349_s17 }
   0x6   : > { %s111_s23 = ssub.s32 %s2353_s18, %s2416_s21  ;;  %p124_p0 = scmp.ne.s32.totalorder %s2349_s17, %s2345_s16 }
   0x7   : > { %p112_p1 = scmp.eq.s32.totalorder %s111_s23, 0  ;;  %p125_p2 = scmp.eq.s32.totalorder %s2412_s19, 1 }
   0x8   : > { %p130_p3 = scmp.ne.s32.totalorder %s2345_s16, %s2341_s15  ;;  %p131_p4 = scmp.eq.s32.totalorder %s1581_s20, 1 }
   0x9   : > { %s2427_s24 = scalar_select %p112_p1, %s2349_s17, %s114_s22  }
   0xa   : > { %p2429_p5 = por %p125_p2, %p124_p0  ;;  %p2433_p6 = por %p131_p4, %p130_p3 }
   0xb   : > { %p1582_p7 = scmp.ge.s32.totalorder %s2353_s18, 1  ;;  %p138_p8 = scmp.lt.s32.totalorder %s2353_s18, 3 }
   0xc   : > { %s3153_s25 = scalar_select %p2429_p5, 1, 0 }
   0xd   : > { %s3154_s26 = scalar_select %p2433_p6, 1, 0 }
   0xe   : > { %p3141_p9 = scmp.eq.s32.totalorder %s2412_s19, 0  ;;  %p2440_p10 = pnand %p1582_p7, %p138_p8 }
   0xf   : > { %s2355_s28 = smov [#allocation3]   ;;  %s2259_s7 = scalar_lea.hbm %s3138_s2, 1024 }
  0x10   : > { %s3155_s27 = scalar_select %p2440_p10, 1, 0 }
  0x11   : > { %s153_s29 = sshll.u32 %s2355_s28, 4  ;;  %p2206_p11 = pneg %p2440_p10  ;;  %s154_s29 = int_to_ptr.vmem [resolvable:$true] %s153_s29 }
  0x12   : > { %p2260_p13 = scmp.ne.s32.totalorder %s3138_s2, %s2259_s7  ;;  %p2266_p3 = scmp.lt.u32.totalorder %s2259_s7, %s3138_s2 }
  0x13   : > { %p2448_p12 = pnand %p3141_p9, %p2206_p11 }
  0x15   : > { %p2261_p0 = pneg %p2448_p12 }
  0x17   : > { %p2262_p1 = pnand %p2261_p0, %p2260_p13 }
  0x19   : > { %p2263_p2 = pneg %p2262_p1 }
  0x1b   : > { %p2268_p4 = pnand %p2266_p3, %p2263_p2 }
  0x1d   : > { %2271 = shalt.err (!%p2268_p4)
}
  0x1e   : > { %s2272_s12 = scalar_lea.vmem %s154_s29, 1024  ;;  %p2280_p9 = scmp.lt.s32.totalorder %s154_s29, %s154_s29 }
  0x1f   : > { %p2273_p7 = scmp.ne.s32.totalorder %s154_s29, %s2272_s12  ;;  %p2281_p6 = scmp.lt.s32.totalorder %s2272_s12, %s2272_s12 }
  0x21   : > { %p2275_p8 = pnand %p2273_p7, %p2261_p0  ;;  %p2282_p5 = por %p2281_p6, %p2280_p9 }
  0x23   : > { %p2276_p11 = pneg %p2275_p8 }
  0x25   : > { %p2283_p10 = pnand %p2282_p5, %p2276_p11 }
  0x27   : > { %2286 = shalt.err (!%p2283_p10)
}
  0x28   : > { %s2356_s13 = smov 128   ;;  %s2357_s14 = smov 8  }
  0x29   : > { %2209 = dma.hbm_to_vmem [thread:$0]  (!%p2448_p12), %s3138_s2, 1024, %s154_s29, [#allocation4], %s2356_s13, %s2356_s13, %s2357_s14  }
  0x2a   : > { %p3157_p13 = scmp.ne.s32.totalorder %s3155_s27, 0 }
  0x2c   : > { %181 = sbr.rel (%p3157_p13) target bundleno = 1202 (0x4b2), region = 36 }
  0x33   : > { %p3158_p1 = scmp.eq.s32.totalorder %s2412_s19, 0 }
  0x35   : > { %2332 = dma.done.wait (%p3158_p1), [#allocation4], 1024   ;;  %p3159_p0 = pmov %p3158_p1 }
  0x36   : > { %s1588_s23 = sshll.u32 %s2412_s19, 4  ;;  %vm230_vm0 = vcmask 97280   ;;  %v247_v19 = vld [vmem:[%s3136_s0] sm:$0xff]  ;;  %v2582_v25 = vld [vmem:[%s3136_s0 + $0x8] sm:$0xff]  ;;  %v2587_v26 = vld [vmem:[%s3136_s0 + $0x10] sm:$0xff]  ;;  %s2358_s27 = smov 12  }
  0x37   : > { %2334 = vsyncadd (%p3159_p0), [#allocation4], 4294966272  ;;  %p208_p5 = scmp.lt.s32.totalorder %s1588_s23, 31  ;;  %1814 = vmatprep.mubr.f32.mxu0 %v247_v19  ;;  %1870 = vmatprep.mubr.f32.mxu1 %v247_v19  ;;  %v2594_v27 = vld [vmem:[%s3136_s0 + $0x18] sm:$0xff]  ;;  %v2599_v28 = vld [vmem:[%s3136_s0 + $0x20] sm:$0xff]  ;;  %vm472_vm1 = vcmask 195680  }
  0x38   : > { %v2606_v29 = vld [vmem:[%s3136_s0 + $0x28] sm:$0xff]  ;;  %v2611_v30 = vld [vmem:[%s3136_s0 + $0x30] sm:$0xff]  ;;  %v2618_v31 = vld [vmem:[%s3136_s0 + $0x38] sm:$0xff]  ;;  %s2359_s30 = smov 36   ;;  %s2360_s5 = smov 24   ;;  %vm730_vm2 = vcmask 294080  }
  0x39   : > { %s3185_s23 = smov (!%p208_p5, %s1588_s23), 31  ;;  %v2623_v32 = vld [vmem:[%s3136_s0 + $0x40] sm:$0xff]  ;;  %v2630_v33 = vld [vmem:[%s3136_s0 + $0x48] sm:$0xff]  ;;  %v2635_v34 = vld [vmem:[%s3136_s0 + $0x50] sm:$0xff]  ;;  %vm973_vm3 = vcmask 392480   ;;  %vm1328_vm4 = vcmask 1043456  }
  0x3a   : > { %s1589_s28 = sshll.u32 %s3185_s23, 3  ;;  %v2642_v35 = vld [vmem:[%s3136_s0 + $0x58] sm:$0xff]  ;;  %v2647_v36 = vld [vmem:[%s3136_s0 + $0x60] sm:$0xff]  ;;  %v2654_v37 = vld [vmem:[%s3136_s0 + $0x68] sm:$0xff]  ;;  %vm2361_vm5 = vmmov 1   ;;  %vm1231_vm7 = vcmask 490880  }
  0x3b   : > { %s2478_s6 = scalar_lea.vmem %s3137_s1, %s1589_s28  ;;  %v2659_v38 = vld [vmem:[%s3136_s0 + $0x70] sm:$0xff]  ;;  %v2666_v39 = vld [vmem:[%s3136_s0 + $0x78] sm:$0xff]  ;;  %v2672_v40 = vld [vmem:[%s3136_s0 + $0x80] sm:$0xff]  ;;  %vm1279_vm8 = vcmask 490496   ;;  %s1629_s10 = sshll.u32 %s2412_s19, 11 }
  0x3c   : > { %v2481_v0 = vld [vmem:[%s2478_s6] sm:$0xff]  ;;  %v2484_v1 = vld [vmem:[%s2478_s6 + $0x8] sm:$0xff]  ;;  %v2487_v2 = vld [vmem:[%s2478_s6 + $0x10] sm:$0xff]  ;;  %s3087_s14 = scalar_lea.hbm %s3140_s4, %s1629_s10  ;;  %p3178_p9 = scmp.ne.s32.totalorder %s3153_s25, 0 }
  0x3d   : > { %231 = vst.msk [vmem:[#allocation2] sm:$0xff] %vm230_vm0, %v2481_v0  ;;  %232 = vst.msk [vmem:[#allocation2 + $0x8] sm:$0xff] %vm230_vm0, %v2484_v1  ;;  %v2046_v3 = vpack.c.bf16 %v2484_v1, %v2481_v0  ;;  %v2496_v4 = vld [vmem:[%s2478_s6 + $0x18] sm:$0xff]  ;;  %v2501_v5 = vld [vmem:[%s2478_s6 + $0x20] sm:$0xff]  ;;  %s2363_s22 = smov [#allocation6]  }
  0x3e   : > { %233 = vst.msk [vmem:[#allocation2 + $0x10] sm:$0xff] %vm230_vm0, %v2487_v2  ;;  %v2504_v6 = vld [vmem:[%s2478_s6 + $0x28] sm:$0xff]  ;;  %v2050_v7 = vpack.c.bf16 %v2496_v4, %v2487_v2  ;;  %234 = vst.msk [vmem:[#allocation2 + $0x18] sm:$0xff] %vm230_vm0, %v2496_v4  ;;  %v2515_v8 = vld [vmem:[%s2478_s6 + $0x30] sm:$0xff]  ;;  %s2291_s23 = sshll.u32 %s2363_s22, 4  ;;  %s2292_s23 = int_to_ptr.vmem [resolvable:$false] %s2291_s23 }
  0x3f   : > { %235 = vst.msk [vmem:[#allocation2 + $0x20] sm:$0xff] %vm230_vm0, %v2501_v5  ;;  %236 = vst.msk [vmem:[#allocation2 + $0x28] sm:$0xff] %vm230_vm0, %v2504_v6  ;;  %v2518_v9 = vld [vmem:[%s2478_s6 + $0x38] sm:$0xff]  ;;  %v2521_v10 = vld [vmem:[%s2478_s6 + $0x40] sm:$0xff]  ;;  %2047 = vmatprep.subr.bf16.mxu0 %v2046_v3  ;;  %v2054_v17 = vpack.c.bf16 %v2504_v6, %v2501_v5  ;;  %s2293_s28 = scalar_lea.vmem %s2292_s23, 4096 }
  0x40   : > { %237 = vst.msk [vmem:[#allocation2 + $0x30] sm:$0xff] %vm230_vm0, %v2515_v8  ;;  %238 = vst.msk [vmem:[#allocation2 + $0x38] sm:$0xff] %vm230_vm0, %v2518_v9  ;;  %v2528_v11 = vld [vmem:[%s2478_s6 + $0x48] sm:$0xff]  ;;  %v2533_v12 = vld [vmem:[%s2478_s6 + $0x50] sm:$0xff]  ;;  %2049 = vmatpush3.bf16.msra.mxu0 %v2046_v3  ;;  %v2058_v20 = vpack.c.bf16 %v2518_v9, %v2515_v8 }
  0x41   : > { %239 = vst.msk [vmem:[#allocation2 + $0x40] sm:$0xff] %vm230_vm0, %v2521_v10  ;;  %v2536_v13 = vld [vmem:[%s2478_s6 + $0x58] sm:$0xff]  ;;  %240 = vst.msk [vmem:[#allocation2 + $0x48] sm:$0xff] %vm230_vm0, %v2528_v11  ;;  %v2545_v14 = vld [vmem:[%s2478_s6 + $0x60] sm:$0xff]  ;;  %2051 = vmatprep.subr.bf16.mxu0 %v2050_v7  ;;  %v2062_v21 = vpack.c.bf16 %v2528_v11, %v2521_v10 }
  0x42   : > { %241 = vst.msk [vmem:[#allocation2 + $0x50] sm:$0xff] %vm230_vm0, %v2533_v12  ;;  %242 = vst.msk [vmem:[#allocation2 + $0x58] sm:$0xff] %vm230_vm0, %v2536_v13  ;;  %v2548_v15 = vld [vmem:[%s2478_s6 + $0x68] sm:$0xff]  ;;  %v2551_v16 = vld [vmem:[%s2478_s6 + $0x70] sm:$0xff]  ;;  %v2066_v22 = vpack.c.bf16 %v2536_v13, %v2533_v12 }
  0x43   : > { %243 = vst.msk [vmem:[#allocation2 + $0x60] sm:$0xff] %vm230_vm0, %v2545_v14  ;;  %244 = vst.msk [vmem:[#allocation2 + $0x68] sm:$0xff] %vm230_vm0, %v2548_v15  ;;  %v2560_v18 = vld [vmem:[%s2478_s6 + $0x78] sm:$0xff]  ;;  %v2070_v23 = vpack.c.bf16 %v2548_v15, %v2545_v14  ;;  %s2362_s6 = smov 48  }
  0x44   : > { %245 = vst.msk [vmem:[#allocation2 + $0x70] sm:$0xff] %vm230_vm0, %v2551_v16  ;;  %246 = vst.msk [vmem:[#allocation2 + $0x78] sm:$0xff] %vm230_vm0, %v2560_v18  ;;  %2053 = vmatpush3.bf16.msra.mxu0 %v2050_v7  ;;  %v2074_v24 = vpack.c.bf16 %v2560_v18, %v2551_v16  ;;  %v2752_v7 = vld [vmem:[%s3136_s0 + $0x88] sm:$0xff]  ;;  %v2767_v19 = vld [vmem:[%s3136_s0 + $0x98] sm:$0xff] }
  0x45   : > { %2055 = vmatprep.subr.bf16.mxu0 %v2054_v17  ;;  %vm2187_vm6 = vmpackc.low %vm1328_vm4, %vm2361_vm5 }
  0x48   : > { %2057 = vmatpush3.bf16.msra.mxu0 %v2054_v17  ;;  %v2759_v17 = vld [vmem:[%s3136_s0 + $0x90] sm:$0xff] }
  0x49   : > { %2059 = vmatprep.subr.bf16.mxu0 %v2058_v20 }
  0x4c   : > { %2061 = vmatpush3.bf16.msra.mxu0 %v2058_v20  ;;  %v2775_v20 = vld [vmem:[%s3136_s0 + $0xa0] sm:$0xff] }
  0x4d   : > { %2063 = vmatprep.subr.bf16.mxu0 %v2062_v21 }
  0x50   : > { %2065 = vmatpush3.bf16.msra.mxu0 %v2062_v21  ;;  %v2783_v21 = vld [vmem:[%s3136_s0 + $0xa8] sm:$0xff] }
  0x51   : > { %2067 = vmatprep.subr.bf16.mxu0 %v2066_v22 }
  0x54   : > { %2069 = vmatpush3.bf16.msra.mxu0 %v2066_v22  ;;  %v2791_v22 = vld [vmem:[%s3136_s0 + $0xb0] sm:$0xff] }
  0x55   : > { %2071 = vmatprep.subr.bf16.mxu0 %v2070_v23 }
  0x58   : > { %2073 = vmatpush3.bf16.msra.mxu0 %v2070_v23  ;;  %v2799_v23 = vld [vmem:[%s3136_s0 + $0xb8] sm:$0xff] }
  0x59   : > { %2075 = vmatprep.subr.bf16.mxu0 %v2074_v24 }
  0x5c   : > { %2077 = vmatpush3.bf16.msra.mxu0 %v2074_v24  ;;  %v2805_v24 = vld [vmem:[%s3136_s0 + $0xc0] sm:$0xff] }
  0x5f   : > { %1815 = vmatmul.mubr.f32.vlgmr.msra.gmra.mrb[0].mxu0 %v2582_v25 }
  0x60   : > { %1817 = vmatprep.mubr.f32.mxu0 %v2587_v26 }
  0x63   : > { %1818 = vmatmul.mubr.f32.gmra.mrb[2].mxu0 %v2594_v27 }
  0x64   : > { %1820 = vmatprep.mubr.f32.mxu0 %v2599_v28 }
  0x67   : > { %1821 = vmatmul.mubr.f32.gmra.mrb[4].mxu0 %v2606_v29 }
  0x68   : > { %1823 = vmatprep.mubr.f32.mxu0 %v2611_v30 }
  0x6b   : > { %1824 = vmatmul.mubr.f32.gmra.mrb[6].mxu0 %v2618_v31 }
  0x6c   : > { %1826 = vmatprep.mubr.f32.mxu0 %v2623_v32 }
  0x6f   : > { %1827 = vmatmul.mubr.f32.gmra.mrb[8].mxu0 %v2630_v33 }
  0x70   : > { %1829 = vmatprep.mubr.f32.mxu0 %v2635_v34 }
  0x73   : > { %1830 = vmatmul.mubr.f32.gmra.mrb[10].mxu0 %v2642_v35 }
  0x74   : > { %1832 = vmatprep.mubr.f32.mxu0 %v2647_v36 }
  0x77   : > { %1833 = vmatmul.mubr.f32.gmra.mrb[12].mxu0 %v2654_v37 }
  0x78   : > { %1835 = vmatprep.mubr.f32.mxu0 %v2659_v38 }
  0x7b   : > { %1836 = vmatmul.mubr.f32.gmra.mrb[14].mxu0 %v2666_v39 }
  0x7c   : > { %1926 = vmatprep.mubr.f32.mxu0 %v2672_v40 }
 0x132   : > { %v2675_v41 = vpop.f32.mrb[0].mxu0 }
 0x133   : > { %426 = vrot.lane.b32.xlu1 %v2675_v41, %s2358_s27  ;;  %v2679_v42 = vpop.f32.mrb[1].mxu0 }
 0x134   : > { %v2078_v43 = vpack.c.bf16 %v2675_v41, %v2679_v42  ;;  %424 = vrot.lane.b32.xlu0 %v2679_v42, %s2358_s27 }
 0x136   : > { %v2685_v44 = vpop.f32.mrb[2].mxu0  ;;  %2079 = vmatprep.subr.bf16.mxu1 %v2078_v43  ;;  %2111 = vmatprep.subr.bf16.mxu0 %v2078_v43 }
 0x137   : > { %v2687_v45 = vpop.f32.mrb[3].mxu0  ;;  %2081 = vmatpush3.bf16.msra.mxu1 %v2078_v43  ;;  %2113 = vmatpush3.bf16.msra.mxu0 %v2078_v43 }
 0x138   : > { %v2082_v46 = vpack.c.bf16 %v2685_v44, %v2687_v45  ;;  %430 = vrot.lane.b32.xlu0 %v2685_v44, %s2358_s27 }
 0x13a   : > { %v2693_v47 = vpop.f32.mrb[4].mxu0  ;;  %2083 = vmatprep.subr.bf16.mxu1 %v2082_v46  ;;  %2115 = vmatprep.subr.bf16.mxu0 %v2082_v46 }
 0x13b   : > { %v2695_v48 = vpop.f32.mrb[5].mxu0  ;;  %2085 = vmatpush3.bf16.msra.mxu1 %v2082_v46  ;;  %2117 = vmatpush3.bf16.msra.mxu0 %v2082_v46 }
 0x13c   : > { %v2086_v49 = vpack.c.bf16 %v2693_v47, %v2695_v48  ;;  %428 = vrot.lane.b32.xlu0 %v2687_v45, %s2358_s27 }
 0x13e   : > { %v2701_v50 = vpop.f32.mrb[6].mxu0  ;;  %2087 = vmatprep.subr.bf16.mxu1 %v2086_v49  ;;  %2119 = vmatprep.subr.bf16.mxu0 %v2086_v49 }
 0x13f   : > { %v2703_v51 = vpop.f32.mrb[7].mxu0  ;;  %2089 = vmatpush3.bf16.msra.mxu1 %v2086_v49  ;;  %2121 = vmatpush3.bf16.msra.mxu0 %v2086_v49 }
 0x140   : > { %3160 = vst [vmem:[#allocation9_spill] sm:$0xff] %v2703_v51  ;;  %v2090_v52 = vpack.c.bf16 %v2701_v50, %v2703_v51  ;;  %434 = vrot.lane.b32.xlu0 %v2693_v47, %s2358_s27 }
 0x142   : > { %v2709_v53 = vpop.f32.mrb[8].mxu0  ;;  %2091 = vmatprep.subr.bf16.mxu1 %v2090_v52  ;;  %2123 = vmatprep.subr.bf16.mxu0 %v2090_v52 }
 0x143   : > { %3161 = vst [vmem:[#allocation10_spill] sm:$0xff] %v2709_v53  ;;  %2093 = vmatpush3.bf16.msra.mxu1 %v2090_v52  ;;  %2125 = vmatpush3.bf16.msra.mxu0 %v2090_v52  ;;  %v2711_v54 = vpop.f32.mrb[9].mxu0 }
 0x144   : > { %3162 = vst [vmem:[#allocation11_spill] sm:$0xff] %v2711_v54  ;;  %442 = vrot.lane.b32.xlu1 %v2709_v53, %s2358_s27  ;;  %v2094_v55 = vpack.c.bf16 %v2709_v53, %v2711_v54  ;;  %432 = vrot.lane.b32.xlu0 %v2695_v48, %s2358_s27 }
 0x146   : > { %v2719_v56 = vpop.f32.mrb[10].mxu0  ;;  %2095 = vmatprep.subr.bf16.mxu1 %v2094_v55  ;;  %2127 = vmatprep.subr.bf16.mxu0 %v2094_v55 }
 0x147   : > { %3163 = vst [vmem:[#allocation12_spill] sm:$0xff] %v2719_v56  ;;  %2097 = vmatpush3.bf16.msra.mxu1 %v2094_v55  ;;  %2129 = vmatpush3.bf16.msra.mxu0 %v2094_v55  ;;  %v2721_v57 = vpop.f32.mrb[11].mxu0 }
 0x148   : > { %3164 = vst [vmem:[#allocation13_spill] sm:$0xff] %v2721_v57  ;;  %446 = vrot.lane.b32.xlu1 %v2719_v56, %s2358_s27  ;;  %v2098_v58 = vpack.c.bf16 %v2719_v56, %v2721_v57  ;;  %438 = vrot.lane.b32.xlu0 %v2701_v50, %s2358_s27 }
 0x14a   : > { %v2729_v59 = vpop.f32.mrb[12].mxu0  ;;  %2099 = vmatprep.subr.bf16.mxu1 %v2098_v58  ;;  %2131 = vmatprep.subr.bf16.mxu0 %v2098_v58 }
 0x14b   : > { %3165 = vst [vmem:[#allocation14_spill] sm:$0xff] %v2729_v59  ;;  %v2731_v60 = vpop.f32.mrb[13].mxu0  ;;  %2101 = vmatpush3.bf16.msra.mxu1 %v2098_v58  ;;  %2133 = vmatpush3.bf16.msra.mxu0 %v2098_v58 }
 0x14c   : > { %3166 = vst [vmem:[#allocation15_spill] sm:$0xff] %v2731_v60  ;;  %444 = vrot.lane.b32.xlu1 %v2721_v57, %s2358_s27  ;;  %v2102_v61 = vpack.c.bf16 %v2729_v59, %v2731_v60  ;;  %436 = vrot.lane.b32.xlu0 %v2703_v51, %s2358_s27 }
 0x14e   : > { %v2739_v62 = vpop.f32.mrb[14].mxu0  ;;  %2103 = vmatprep.subr.bf16.mxu1 %v2102_v61  ;;  %2135 = vmatprep.subr.bf16.mxu0 %v2102_v61 }
 0x14f   : > { %3167 = vst [vmem:[#allocation16_spill] sm:$0xff] %v2739_v62  ;;  %v2741_v63 = vpop.f32.mrb[15].mxu0  ;;  %2105 = vmatpush3.bf16.msra.mxu1 %v2102_v61  ;;  %2137 = vmatpush3.bf16.msra.mxu0 %v2102_v61 }
 0x150   : > { %3168 = vst [vmem:[#allocation17_spill] sm:$0xff] %v2741_v63  ;;  %450 = vrot.lane.b32.xlu1 %v2729_v59, %s2358_s27  ;;  %v2106_v3 = vpack.c.bf16 %v2739_v62, %v2741_v63  ;;  %440 = vrot.lane.b32.xlu0 %v2711_v54, %s2358_s27 }
 0x152   : > { %2107 = vmatprep.subr.bf16.mxu1 %v2106_v3  ;;  %2139 = vmatprep.subr.bf16.mxu0 %v2106_v3 }
 0x153   : > { %2109 = vmatpush3.bf16.msra.mxu1 %v2106_v3  ;;  %2141 = vmatpush3.bf16.msra.mxu0 %v2106_v3 }
 0x154   : > { %448 = vrot.lane.b32.xlu1 %v2731_v60, %s2358_s27 }
 0x156   : > { %1927 = vmatmul.mubr.f32.vlgmr.msra.gmra.mrb[16].mxu0 %v2752_v7  ;;  %1871 = vmatmul.mubr.f32.vlgmr.msra.gmra.mrb[0].mxu1 %v2582_v25  ;;  %v2813_v25 = vld [vmem:[%s3136_s0 + $0xc8] sm:$0xff] }
 0x157   : > { %1929 = vmatprep.mubr.f32.mxu0 %v2759_v17  ;;  %1873 = vmatprep.mubr.f32.mxu1 %v2587_v26  ;;  %v2819_v26 = vld [vmem:[%s3136_s0 + $0xd0] sm:$0xff] }
 0x158   : > { %454 = vrot.lane.b32.xlu1 %v2739_v62, %s2358_s27 }
 0x15a   : > { %1930 = vmatmul.mubr.f32.gmra.mrb[18].mxu0 %v2767_v19  ;;  %1874 = vmatmul.mubr.f32.gmra.mrb[2].mxu1 %v2594_v27  ;;  %v2827_v27 = vld [vmem:[%s3136_s0 + $0xd8] sm:$0xff] }
 0x15b   : > { %1932 = vmatprep.mubr.f32.mxu0 %v2775_v20  ;;  %1876 = vmatprep.mubr.f32.mxu1 %v2599_v28  ;;  %v2833_v28 = vld [vmem:[%s3136_s0 + $0xe0] sm:$0xff] }
 0x15c   : > { %452 = vrot.lane.b32.xlu1 %v2741_v63, %s2358_s27  ;;  %s204_s27 = sand.u32 1, %s2345_s16  }
 0x15d   : > { %s1587_s29 = sshll.u32 %s204_s27, 7  ;;  %s3095_s20 = scalar_lea.sflag [#allocation5], %s204_s27 }
 0x15e   : > { %1933 = vmatmul.mubr.f32.gmra.mrb[20].mxu0 %v2783_v21  ;;  %1877 = vmatmul.mubr.f32.gmra.mrb[4].mxu1 %v2606_v29  ;;  %v2841_v29 = vld [vmem:[%s3136_s0 + $0xe8] sm:$0xff]  ;;  %s3066_s9 = scalar_lea.vmem [#allocation6], %s1587_s29 }
 0x15f   : > { %1935 = vmatprep.mubr.f32.mxu0 %v2791_v22  ;;  %1879 = vmatprep.mubr.f32.mxu1 %v2611_v30  ;;  %v2847_v30 = vld [vmem:[%s3136_s0 + $0xf0] sm:$0xff]  ;;  %s1507_s11 = sshll.u32 %s3066_s9, 4  ;;  %s3089_s11 = int_to_ptr.vmem [resolvable:$true] %s1507_s11 }
 0x160   : > { %s2287_s19 = scalar_lea.vmem %s3089_s11, 2048  ;;  %p2294_p2 = scmp.lt.s32.totalorder %s3089_s11, %s2292_s23 }
 0x161   : > { %p2288_p6 = scmp.ne.s32.totalorder %s3089_s11, %s2287_s19  ;;  %p2295_p3 = scmp.lt.s32.totalorder %s2293_s28, %s2287_s19 }
 0x162   : > { %1936 = vmatmul.mubr.f32.gmra.mrb[22].mxu0 %v2799_v23  ;;  %1880 = vmatmul.mubr.f32.gmra.mrb[6].mxu1 %v2618_v31  ;;  %v2855_v31 = vld [vmem:[%s3136_s0 + $0xf8] sm:$0xff] }
 0x163   : > { %1938 = vmatprep.mubr.f32.mxu0 %v2805_v24  ;;  %1882 = vmatprep.mubr.f32.mxu1 %v2623_v32  ;;  %p2289_p10 = pnand %p2288_p6, %p3178_p9  ;;  %p2296_p4 = por %p2295_p3, %p2294_p2 }
 0x165   : > { %p2290_p12 = pneg %p2289_p10 }
 0x166   : > { %1939 = vmatmul.mubr.f32.gmra.mrb[24].mxu0 %v2813_v25  ;;  %1883 = vmatmul.mubr.f32.gmra.mrb[8].mxu1 %v2630_v33 }
 0x167   : > { %1941 = vmatprep.mubr.f32.mxu0 %v2819_v26  ;;  %1885 = vmatprep.mubr.f32.mxu1 %v2635_v34  ;;  %p2297_p7 = pnand %p2296_p4, %p2290_p12 }
 0x16a   : > { %1942 = vmatmul.mubr.f32.gmra.mrb[26].mxu0 %v2827_v27  ;;  %1886 = vmatmul.mubr.f32.gmra.mrb[10].mxu1 %v2642_v35 }
 0x16b   : > { %1944 = vmatprep.mubr.f32.mxu0 %v2833_v28  ;;  %1888 = vmatprep.mubr.f32.mxu1 %v2647_v36 }
 0x16e   : > { %1945 = vmatmul.mubr.f32.gmra.mrb[28].mxu0 %v2841_v29  ;;  %1889 = vmatmul.mubr.f32.gmra.mrb[12].mxu1 %v2654_v37 }
 0x16f   : > { %1947 = vmatprep.mubr.f32.mxu0 %v2847_v30  ;;  %1891 = vmatprep.mubr.f32.mxu1 %v2659_v38 }
 0x172   : > { %1948 = vmatmul.mubr.f32.gmra.mrb[30].mxu0 %v2855_v31  ;;  %1892 = vmatmul.mubr.f32.gmra.mrb[14].mxu1 %v2666_v39 }
 0x173   : > { %1982 = vmatprep.mubr.f32.mxu1 %v2672_v40 }
 0x1a5   : > { %v427_v32 = vpop.permute.xlu1 %426 }
 0x1a6   : > { %474 = vst.msk [vmem:[#allocation2 + $0x8] sm:$0xff] %vm472_vm1, %v427_v32  ;;  %v425_v33 = vpop.permute.xlu0 %424 }
 0x1a7   : > { %473 = vst.msk [vmem:[#allocation2] sm:$0xff] %vm472_vm1, %v425_v33 }
 0x1aa   : > { %v431_v34 = vpop.permute.xlu0 %430 }
 0x1ab   : > { %476 = vst.msk [vmem:[#allocation2 + $0x18] sm:$0xff] %vm472_vm1, %v431_v34 }
 0x1ae   : > { %v429_v35 = vpop.permute.xlu0 %428 }
 0x1af   : > { %475 = vst.msk [vmem:[#allocation2 + $0x10] sm:$0xff] %vm472_vm1, %v429_v35 }
 0x1b2   : > { %v435_v36 = vpop.permute.xlu0 %434 }
 0x1b3   : > { %478 = vst.msk [vmem:[#allocation2 + $0x28] sm:$0xff] %vm472_vm1, %v435_v36 }
 0x1b6   : > { %v443_v37 = vpop.permute.xlu1 %442  ;;  %v433_v38 = vpop.permute.xlu0 %432 }
 0x1b7   : > { %482 = vst.msk [vmem:[#allocation2 + $0x48] sm:$0xff] %vm472_vm1, %v443_v37  ;;  %477 = vst.msk [vmem:[#allocation2 + $0x20] sm:$0xff] %vm472_vm1, %v433_v38 }
 0x1ba   : > { %v447_v39 = vpop.permute.xlu1 %446  ;;  %v439_v40 = vpop.permute.xlu0 %438 }
 0x1bb   : > { %484 = vst.msk [vmem:[#allocation2 + $0x58] sm:$0xff] %vm472_vm1, %v447_v39  ;;  %480 = vst.msk [vmem:[#allocation2 + $0x38] sm:$0xff] %vm472_vm1, %v439_v40 }
 0x1be   : > { %v445_v43 = vpop.permute.xlu1 %444  ;;  %v437_v46 = vpop.permute.xlu0 %436 }
 0x1bf   : > { %483 = vst.msk [vmem:[#allocation2 + $0x50] sm:$0xff] %vm472_vm1, %v445_v43  ;;  %479 = vst.msk [vmem:[#allocation2 + $0x30] sm:$0xff] %vm472_vm1, %v437_v46 }
 0x1c2   : > { %v451_v49 = vpop.permute.xlu1 %450  ;;  %v441_v52 = vpop.permute.xlu0 %440 }
 0x1c3   : > { %486 = vst.msk [vmem:[#allocation2 + $0x68] sm:$0xff] %vm472_vm1, %v451_v49  ;;  %481 = vst.msk [vmem:[#allocation2 + $0x40] sm:$0xff] %vm472_vm1, %v441_v52 }
 0x1c6   : > { %v449_v55 = vpop.permute.xlu1 %448 }
 0x1c7   : > { %485 = vst.msk [vmem:[#allocation2 + $0x60] sm:$0xff] %vm472_vm1, %v449_v55 }
 0x1ca   : > { %v455_v58 = vpop.permute.xlu1 %454 }
 0x1cb   : > { %488 = vst.msk [vmem:[#allocation2 + $0x78] sm:$0xff] %vm472_vm1, %v455_v58 }
 0x1ce   : > { %v453_v61 = vpop.permute.xlu1 %452 }
 0x1cf   : > { %487 = vst.msk [vmem:[#allocation2 + $0x70] sm:$0xff] %vm472_vm1, %v453_v61 }
 0x229   : > { %v1928_v3 = vpop.f32.mrb[16].mxu0  ;;  %v1872_v32 = vpop.f32.mrb[0].mxu1 }
 0x22a   : > { %927 = vrot.lane.b32.xlu0 %v1928_v3, %s2359_s30  ;;  %v830_v33 = vpop.f32.mrb[17].mxu0  ;;  %v635_v34 = vmul.f32 2.0, %v1872_v32  ;;  %v555_v35 = vpop.f32.mrb[1].mxu1 }
 0x22b   : > { %v2142_v36 = vpack.c.bf16 %v1928_v3, %v830_v33  ;;  %v634_v61 = vmul.f32 2.0, %v555_v35 }
 0x22c   : > { %v651_v39 = vsub.f32 %v635_v34, %v2484_v1 }
 0x22d   : > { %v1931_v37 = vpop.f32.mrb[18].mxu0  ;;  %2143 = vmatprep.subr.bf16.mxu1 %v2142_v36  ;;  %v1875_v38 = vpop.f32.mrb[2].mxu1 }
 0x22e   : > { %925 = vrot.lane.b32.xlu0 %v830_v33, %s2359_s30  ;;  %v840_v40 = vpop.f32.mrb[19].mxu0  ;;  %2145 = vmatpush3.bf16.msra.mxu1 %v2142_v36  ;;  %v565_v43 = vpop.f32.mrb[3].mxu1  ;;  %v650_v36 = vsub.f32 %v634_v61, %v2481_v0  ;;  %v637_v59 = vmul.f32 2.0, %v1875_v38 }
 0x22f   : > { %v2146_v46 = vpack.c.bf16 %v1931_v37, %v840_v40 }
 0x230   : > { %v653_v54 = vsub.f32 %v637_v59, %v2496_v4 }
 0x231   : > { %v1934_v49 = vpop.f32.mrb[20].mxu0  ;;  %2147 = vmatprep.subr.bf16.mxu1 %v2146_v46  ;;  %v2880_v52 = vpop.f32.mrb[4].mxu1 }
 0x232   : > { %v2882_v55 = vpop.f32.mrb[21].mxu0  ;;  %2149 = vmatpush3.bf16.msra.mxu1 %v2146_v46  ;;  %684 = vrot.lane.b32.xlu0 %v651_v39, %s2360_s5  ;;  %v2885_v58 = vpop.f32.mrb[5].mxu1 }
 0x233   : > { %v2150_v1 = vpack.c.bf16 %v1934_v49, %v2882_v55 }
 0x235   : > { %v2888_v3 = vpop.f32.mrb[22].mxu0  ;;  %2151 = vmatprep.subr.bf16.mxu1 %v2150_v1  ;;  %v2890_v32 = vpop.f32.mrb[6].mxu1 }
 0x236   : > { %v2892_v33 = vpop.f32.mrb[23].mxu0  ;;  %2153 = vmatpush3.bf16.msra.mxu1 %v2150_v1  ;;  %931 = vrot.lane.b32.xlu0 %v1931_v37, %s2359_s30  ;;  %v2895_v34 = vpop.f32.mrb[7].mxu1 }
 0x237   : > { %v2154_v39 = vpack.c.bf16 %v2888_v3, %v2892_v33 }
 0x239   : > { %v1940_v46 = vpop.f32.mrb[24].mxu0  ;;  %2155 = vmatprep.subr.bf16.mxu1 %v2154_v39  ;;  %v1884_v35 = vpop.f32.mrb[8].mxu1 }
 0x23a   : > { %943 = vrot.lane.b32.xlu1 %v1940_v46, %s2359_s30  ;;  %v870_v63 = vpop.f32.mrb[25].mxu0  ;;  %2157 = vmatpush3.bf16.msra.mxu1 %v2154_v39  ;;  %v643_v62 = vmul.f32 2.0, %v1884_v35  ;;  %v595_v60 = vpop.f32.mrb[9].mxu1 }
 0x23b   : > { %v2158_v1 = vpack.c.bf16 %v1940_v46, %v870_v63  ;;  %682 = vrot.lane.b32.xlu0 %v650_v36, %s2360_s5  ;;  %v642_v36 = vmul.f32 2.0, %v595_v60  ;;  %v639_v60 = vmul.f32 2.0, %v2880_v52 }
 0x23c   : > { %v659_v0 = vsub.f32 %v643_v62, %v2528_v11  ;;  %v636_v11 = vmul.f32 2.0, %v565_v43 }
 0x23d   : > { %v1943_v37 = vpop.f32.mrb[26].mxu0  ;;  %2159 = vmatprep.subr.bf16.mxu1 %v2158_v1  ;;  %v1887_v57 = vpop.f32.mrb[10].mxu1  ;;  %v658_v4 = vsub.f32 %v642_v36, %v2521_v10 }
 0x23e   : > { %941 = vrot.lane.b32.xlu1 %v870_v63, %s2359_s30  ;;  %v880_v61 = vpop.f32.mrb[27].mxu0  ;;  %2161 = vmatpush3.bf16.msra.mxu1 %v2158_v1  ;;  %v605_v56 = vpop.f32.mrb[11].mxu1 }
 0x23f   : > { %v2162_v53 = vpack.c.bf16 %v1943_v37, %v880_v61  ;;  %929 = vrot.lane.b32.xlu0 %v840_v40, %s2359_s30 }
 0x241   : > { %v1946_v39 = vpop.f32.mrb[28].mxu0  ;;  %2163 = vmatprep.subr.bf16.mxu1 %v2162_v53  ;;  %v1890_v38 = vpop.f32.mrb[12].mxu1 }
 0x242   : > { %v890_v46 = vpop.f32.mrb[29].mxu0  ;;  %2165 = vmatpush3.bf16.msra.mxu1 %v2162_v53  ;;  %700 = vrot.lane.b32.xlu1 %v659_v0, %s2360_s5  ;;  %v615_v35 = vpop.f32.mrb[13].mxu1  ;;  %v652_v53 = vsub.f32 %v636_v11, %v2487_v2  ;;  %v655_v2 = vsub.f32 %v639_v60, %v2504_v6  ;;  %v1268_v60 = vld [vmem:[#allocation3 + $0x20] sm:$0xff] }
 0x243   : > { %v2166_v62 = vpack.c.bf16 %v1946_v39, %v890_v46  ;;  %688 = vrot.lane.b32.xlu0 %v653_v54, %s2360_s5  ;;  %v645_v54 = vmul.f32 2.0, %v1887_v57  ;;  %v638_v57 = vmul.f32 2.0, %v2885_v58 }
 0x245   : > { %v1949_v63 = vpop.f32.mrb[30].mxu0  ;;  %2167 = vmatprep.subr.bf16.mxu1 %v2166_v62  ;;  %v1893_v1 = vpop.f32.mrb[14].mxu1  ;;  %v661_v10 = vsub.f32 %v645_v54, %v2536_v13  ;;  %v654_v6 = vsub.f32 %v638_v57, %v2501_v5  ;;  %v1271_v57 = vld [vmem:[#allocation3 + $0x38] sm:$0xf] }
 0x246   : > { %v900_v59 = vpop.f32.mrb[31].mxu0  ;;  %2169 = vmatpush3.bf16.msra.mxu1 %v2166_v62  ;;  %947 = vrot.lane.b32.xlu1 %v1943_v37, %s2359_s30  ;;  %v625_v40 = vpop.f32.mrb[15].mxu1 }
 0x247   : > { %v2170_v51 = vpack.c.bf16 %v1949_v63, %v900_v59  ;;  %935 = vrot.lane.b32.xlu0 %v1934_v49, %s2359_s30 }
 0x249   : > { %2171 = vmatprep.subr.bf16.mxu1 %v2170_v51 }
 0x24a   : > { %2173 = vmatpush3.bf16.msra.mxu1 %v2170_v51  ;;  %698 = vrot.lane.b32.xlu1 %v658_v4, %s2360_s5  ;;  %v644_v51 = vmul.f32 2.0, %v605_v56  ;;  %v647_v56 = vmul.f32 2.0, %v1890_v38  ;;  %v1265_v38 = vld [vmem:[#allocation3 + $0x8] sm:$0xff] }
 0x24b   : > { %686 = vrot.lane.b32.xlu0 %v652_v53, %s2360_s5  ;;  %v1267_v53 = vld [vmem:[#allocation3 + $0x18] sm:$0xff] }
 0x24c   : > { %v660_v13 = vsub.f32 %v644_v51, %v2533_v12  ;;  %v663_v12 = vsub.f32 %v647_v56, %v2548_v15  ;;  %v1270_v51 = vld [vmem:[#allocation3 + $0x30] sm:$0xff] }
 0x24d   : > { %1983 = vmatmul.mubr.f32.vlgmr.msra.gmra.mrb[16].mxu1 %v2752_v7  ;;  %v641_v7 = vmul.f32 2.0, %v2890_v32 }
 0x24e   : > { %945 = vrot.lane.b32.xlu1 %v880_v61, %s2359_s30  ;;  %1985 = vmatprep.mubr.f32.mxu1 %v2759_v17  ;;  %v640_v17 = vmul.f32 2.0, %v2895_v34 }
 0x24f   : > { %933 = vrot.lane.b32.xlu0 %v2882_v55, %s2359_s30  ;;  %v657_v5 = vsub.f32 %v641_v7, %v2518_v9 }
 0x250   : > { %v656_v15 = vsub.f32 %v640_v17, %v2515_v8  ;;  %v648_v8 = vmul.f32 2.0, %v625_v40  ;;  %v1266_v40 = vld [vmem:[#allocation3 + $0x10] sm:$0xff] }
 0x251   : > { %1986 = vmatmul.mubr.f32.gmra.mrb[18].mxu1 %v2767_v19  ;;  %v646_v19 = vmul.f32 2.0, %v615_v35  ;;  %v2178_v54 = vpack.c.bf16 %v1267_v53, %v1266_v40  ;;  %v3177_v40 = vld [vmem:[#allocation17_spill] sm:$0xff] }
 0x252   : > { %704 = vrot.lane.b32.xlu1 %v661_v10, %s2360_s5  ;;  %1988 = vmatprep.mubr.f32.mxu1 %v2775_v20  ;;  %v649_v20 = vmul.f32 2.0, %v1893_v1  ;;  %v1269_v10 = vld [vmem:[#allocation3 + $0x28] sm:$0xff] }
 0x253   : > { %692 = vrot.lane.b32.xlu0 %v655_v2, %s2360_s5  ;;  %v662_v9 = vsub.f32 %v646_v19, %v2545_v14  ;;  %v2182_v2 = vpack.c.bf16 %v1269_v10, %v1268_v60 }
 0x255   : > { %1989 = vmatmul.mubr.f32.gmra.mrb[20].mxu1 %v2783_v21  ;;  %v665_v21 = vsub.f32 %v649_v20, %v2560_v18 }
 0x256   : > { %951 = vrot.lane.b32.xlu1 %v1946_v39, %s2359_s30  ;;  %1991 = vmatprep.mubr.f32.mxu1 %v2791_v22  ;;  %v664_v22 = vsub.f32 %v648_v8, %v2551_v16  ;;  %v1264_v39 = vld [vmem:[#allocation3] sm:$0xff] }
 0x257   : > { %939 = vrot.lane.b32.xlu0 %v2888_v3, %s2359_s30 }
 0x259   : > { %1992 = vmatmul.mubr.f32.gmra.mrb[22].mxu1 %v2799_v23 }
 0x25a   : > { %702 = vrot.lane.b32.xlu1 %v660_v13, %s2360_s5  ;;  %1994 = vmatprep.mubr.f32.mxu1 %v2805_v24 }
 0x25b   : > { %690 = vrot.lane.b32.xlu0 %v654_v6, %s2360_s5  ;;  %v2186_v6 = vpack.c.bf16 %v1271_v57, %v1270_v51 }
 0x25d   : > { %1995 = vmatmul.mubr.f32.gmra.mrb[24].mxu1 %v2813_v25 }
 0x25e   : > { %949 = vrot.lane.b32.xlu1 %v890_v46, %s2359_s30  ;;  %1997 = vmatprep.mubr.f32.mxu1 %v2819_v26  ;;  %v2174_v46 = vpack.c.bf16 %v1265_v38, %v1264_v39  ;;  %v3174_v38 = vld [vmem:[#allocation14_spill] sm:$0xff] }
 0x25f   : > { %937 = vrot.lane.b32.xlu0 %v2892_v33, %s2359_s30 }
 0x260   : > { %2175 = vmatprep.subr.bf16.mxu0 %v2174_v46  ;;  %2192 = vmatprep.subr.bf16.mxu1 %v2174_v46 }
 0x261   : > { %1998 = vmatmul.mubr.f32.gmra.mrb[26].mxu1 %v2827_v27  ;;  %2177 = vmatpush3.bf16.msra.mxu0 %v2174_v46 }
 0x262   : > { %708 = vrot.lane.b32.xlu1 %v663_v12, %s2360_s5  ;;  %2000 = vmatprep.mubr.f32.mxu1 %v2833_v28 }
 0x263   : > { %696 = vrot.lane.b32.xlu0 %v657_v5, %s2360_s5  ;;  %2196 = vmatpush3.bf16.msra.mxu1 %v2174_v46 }
 0x264   : > { %2179 = vmatprep.subr.bf16.mxu0 %v2178_v54  ;;  %2193 = vmatprep.subr.bf16.mxu1 %v2178_v54 }
 0x265   : > { %2001 = vmatmul.mubr.f32.gmra.mrb[28].mxu1 %v2841_v29  ;;  %2181 = vmatpush3.bf16.msra.mxu0 %v2178_v54 }
 0x266   : > { %955 = vrot.lane.b32.xlu1 %v1949_v63, %s2359_s30  ;;  %2003 = vmatprep.mubr.f32.mxu1 %v2847_v30 }
 0x267   : > { %694 = vrot.lane.b32.xlu0 %v656_v15, %s2360_s5  ;;  %2197 = vmatpush3.bf16.msra.mxu1 %v2178_v54 }
 0x268   : > { %2183 = vmatprep.subr.bf16.mxu0 %v2182_v2  ;;  %2194 = vmatprep.subr.bf16.mxu1 %v2182_v2 }
 0x269   : > { %2004 = vmatmul.mubr.f32.gmra.mrb[30].mxu1 %v2855_v31  ;;  %2185 = vmatpush3.bf16.msra.mxu0 %v2182_v2 }
 0x26a   : > { %706 = vrot.lane.b32.xlu1 %v662_v9, %s2360_s5  ;;  %2188 = vmatprep.subr.msk.bf16.mxu0 %vm2187_vm6, %v2186_v6 }
 0x26b   : > { %2198 = vmatpush3.bf16.msra.mxu1 %v2182_v2 }
 0x26c   : > { %2195 = vmatprep.subr.msk.bf16.mxu1 %vm2187_vm6, %v2186_v6 }
 0x26d   : > { %2191 = vmatpush3.bf16.msk.msra.mxu0 %vm2187_vm6, %v2186_v6 }
 0x26e   : > { %953 = vrot.lane.b32.xlu1 %v900_v59, %s2359_s30 }
 0x26f   : > { %2199 = vmatpush3.bf16.msk.msra.mxu1 %vm2187_vm6, %v2186_v6 }
 0x272   : > { %712 = vrot.lane.b32.xlu1 %v665_v21, %s2360_s5 }
 0x276   : > { %710 = vrot.lane.b32.xlu1 %v664_v22, %s2360_s5 }
 0x29c   : > { %v928_v14 = vpop.permute.xlu0 %927 }
 0x2a0   : > { %v926_v23 = vpop.permute.xlu0 %925 }
 0x2a4   : > { %v685_v24 = vpop.permute.xlu0 %684 }
 0x2a5   : > { %732 = vst.msk [vmem:[#allocation2 + $0x8] sm:$0xff] %vm730_vm2, %v685_v24 }
 0x2a6   : > { %975 = vst.msk [vmem:[#allocation2 + $0x8] sm:$0xff] %vm973_vm3, %v928_v14 }
 0x2a8   : > { %v932_v25 = vpop.permute.xlu0 %931 }
 0x2ac   : > { %v944_v18 = vpop.permute.xlu1 %943 }
 0x2ad   : > { %v683_v26 = vpop.permute.xlu0 %682 }
 0x2ae   : > { %731 = vst.msk [vmem:[#allocation2] sm:$0xff] %vm730_vm2, %v683_v26 }
 0x2af   : > { %974 = vst.msk [vmem:[#allocation2] sm:$0xff] %vm973_vm3, %v926_v23 }
 0x2b0   : > { %v942_v16 = vpop.permute.xlu1 %941 }
 0x2b1   : > { %v930_v27 = vpop.permute.xlu0 %929 }
 0x2b4   : > { %v701_v28 = vpop.permute.xlu1 %700 }
 0x2b5   : > { %v689_v29 = vpop.permute.xlu0 %688  ;;  %740 = vst.msk [vmem:[#allocation2 + $0x48] sm:$0xff] %vm730_vm2, %v701_v28 }
 0x2b6   : > { %734 = vst.msk [vmem:[#allocation2 + $0x18] sm:$0xff] %vm730_vm2, %v689_v29 }
 0x2b7   : > { %983 = vst.msk [vmem:[#allocation2 + $0x48] sm:$0xff] %vm973_vm3, %v944_v18  ;;  %977 = vst.msk [vmem:[#allocation2 + $0x18] sm:$0xff] %vm973_vm3, %v932_v25 }
 0x2b8   : > { %v948_v30 = vpop.permute.xlu1 %947 }
 0x2b9   : > { %v936_v31 = vpop.permute.xlu0 %935 }
 0x2bc   : > { %v699_v43 = vpop.permute.xlu1 %698 }
 0x2bd   : > { %v687_v49 = vpop.permute.xlu0 %686  ;;  %739 = vst.msk [vmem:[#allocation2 + $0x40] sm:$0xff] %vm730_vm2, %v699_v43  ;;  %v3170_v43 = vld [vmem:[#allocation10_spill] sm:$0xff] }
 0x2be   : > { %733 = vst.msk [vmem:[#allocation2 + $0x10] sm:$0xff] %vm730_vm2, %v687_v49  ;;  %v3171_v49 = vld [vmem:[#allocation11_spill] sm:$0xff] }
 0x2bf   : > { %982 = vst.msk [vmem:[#allocation2 + $0x40] sm:$0xff] %vm973_vm3, %v942_v16  ;;  %976 = vst.msk [vmem:[#allocation2 + $0x10] sm:$0xff] %vm973_vm3, %v930_v27  ;;  %v3169_v27 = vld [vmem:[#allocation9_spill] sm:$0xff] }
 0x2c0   : > { %v946_v52 = vpop.permute.xlu1 %945 }
 0x2c1   : > { %v934_v55 = vpop.permute.xlu0 %933 }
 0x2c4   : > { %v705_v58 = vpop.permute.xlu1 %704 }
 0x2c5   : > { %v693_v3 = vpop.permute.xlu0 %692  ;;  %742 = vst.msk [vmem:[#allocation2 + $0x58] sm:$0xff] %vm730_vm2, %v705_v58 }
 0x2c6   : > { %736 = vst.msk [vmem:[#allocation2 + $0x28] sm:$0xff] %vm730_vm2, %v693_v3  ;;  %v3172_v3 = vld [vmem:[#allocation12_spill] sm:$0xff] }
 0x2c7   : > { %985 = vst.msk [vmem:[#allocation2 + $0x58] sm:$0xff] %vm973_vm3, %v948_v30  ;;  %979 = vst.msk [vmem:[#allocation2 + $0x28] sm:$0xff] %vm973_vm3, %v936_v31 }
 0x2c8   : > { %v952_v32 = vpop.permute.xlu1 %951 }
 0x2c9   : > { %v940_v33 = vpop.permute.xlu0 %939 }
 0x2cc   : > { %v703_v34 = vpop.permute.xlu1 %702 }
 0x2cd   : > { %v691_v37 = vpop.permute.xlu0 %690  ;;  %741 = vst.msk [vmem:[#allocation2 + $0x50] sm:$0xff] %vm730_vm2, %v703_v34 }
 0x2ce   : > { %735 = vst.msk [vmem:[#allocation2 + $0x20] sm:$0xff] %vm730_vm2, %v691_v37 }
 0x2cf   : > { %984 = vst.msk [vmem:[#allocation2 + $0x50] sm:$0xff] %vm973_vm3, %v946_v52  ;;  %978 = vst.msk [vmem:[#allocation2 + $0x20] sm:$0xff] %vm973_vm3, %v934_v55 }
 0x2d0   : > { %v950_v0 = vpop.permute.xlu1 %949 }
 0x2d1   : > { %v938_v61 = vpop.permute.xlu0 %937 }
 0x2d4   : > { %v709_v36 = vpop.permute.xlu1 %708 }
 0x2d5   : > { %v697_v35 = vpop.permute.xlu0 %696  ;;  %744 = vst.msk [vmem:[#allocation2 + $0x68] sm:$0xff] %vm730_vm2, %v709_v36  ;;  %v3175_v36 = vld [vmem:[#allocation15_spill] sm:$0xff] }
 0x2d6   : > { %738 = vst.msk [vmem:[#allocation2 + $0x38] sm:$0xff] %vm730_vm2, %v697_v35 }
 0x2d7   : > { %987 = vst.msk [vmem:[#allocation2 + $0x68] sm:$0xff] %vm973_vm3, %v952_v32  ;;  %981 = vst.msk [vmem:[#allocation2 + $0x38] sm:$0xff] %vm973_vm3, %v940_v33  ;;  %v3173_v33 = vld [vmem:[#allocation13_spill] sm:$0xff] }
 0x2d8   : > { %v956_v11 = vpop.permute.xlu1 %955 }
 0x2d9   : > { %v695_v62 = vpop.permute.xlu0 %694 }
 0x2da   : > { %737 = vst.msk [vmem:[#allocation2 + $0x30] sm:$0xff] %vm730_vm2, %v695_v62 }
 0x2db   : > { %980 = vst.msk [vmem:[#allocation2 + $0x30] sm:$0xff] %vm973_vm3, %v938_v61 }
 0x2dc   : > { %v707_v63 = vpop.permute.xlu1 %706 }
 0x2dd   : > { %743 = vst.msk [vmem:[#allocation2 + $0x60] sm:$0xff] %vm730_vm2, %v707_v63 }
 0x2de   : > { %986 = vst.msk [vmem:[#allocation2 + $0x60] sm:$0xff] %vm973_vm3, %v950_v0 }
 0x2e0   : > { %v954_v1 = vpop.permute.xlu1 %953 }
 0x2e4   : > { %v713_v4 = vpop.permute.xlu1 %712 }
 0x2e5   : > { %746 = vst.msk [vmem:[#allocation2 + $0x78] sm:$0xff] %vm730_vm2, %v713_v4  ;;  %v3176_v4 = vld [vmem:[#allocation16_spill] sm:$0xff] }
 0x2e6   : > { %989 = vst.msk [vmem:[#allocation2 + $0x78] sm:$0xff] %vm973_vm3, %v956_v11 }
 0x2e8   : > { %v711_v59 = vpop.permute.xlu1 %710 }
 0x2e9   : > { %745 = vst.msk [vmem:[#allocation2 + $0x70] sm:$0xff] %vm730_vm2, %v711_v59 }
 0x2ea   : > { %988 = vst.msk [vmem:[#allocation2 + $0x70] sm:$0xff] %vm973_vm3, %v954_v1 }
 0x320   : > { %v1984_v13 = vpop.f32.mrb[16].mxu1 }
 0x321   : > { %v1136_v56 = vmul.f32 2.0, %v1984_v13  ;;  %v1056_v7 = vpop.f32.mrb[17].mxu1 }
 0x322   : > { %v1135_v12 = vmul.f32 2.0, %v1056_v7 }
 0x323   : > { %v1152_v5 = vsub.f32 %v1136_v56, %v2675_v41 }
 0x324   : > { %v1151_v17 = vsub.f32 %v1135_v12, %v2679_v42  ;;  %v1987_v19 = vpop.f32.mrb[18].mxu1 }
 0x325   : > { %v1138_v15 = vmul.f32 2.0, %v1987_v19  ;;  %1185 = vrot.lane.b32.xlu0 %v1152_v5, %s2362_s6  ;;  %v1066_v9 = vpop.f32.mrb[19].mxu1 }
 0x326   : > { %v1137_v20 = vmul.f32 2.0, %v1066_v9 }
 0x327   : > { %v1154_v21 = vsub.f32 %v1138_v15, %v2685_v44 }
 0x328   : > { %v1153_v8 = vsub.f32 %v1137_v20, %v2687_v45  ;;  %v1990_v22 = vpop.f32.mrb[20].mxu1 }
 0x329   : > { %v1140_v14 = vmul.f32 2.0, %v1990_v22  ;;  %1183 = vrot.lane.b32.xlu0 %v1151_v17, %s2362_s6  ;;  %v1076_v41 = vpop.f32.mrb[21].mxu1 }
 0x32a   : > { %v1139_v23 = vmul.f32 2.0, %v1076_v41 }
 0x32b   : > { %v1156_v24 = vsub.f32 %v1140_v14, %v2693_v47 }
 0x32c   : > { %v1155_v42 = vsub.f32 %v1139_v23, %v2695_v48  ;;  %v1993_v25 = vpop.f32.mrb[22].mxu1 }
 0x32d   : > { %v1142_v18 = vmul.f32 2.0, %v1993_v25  ;;  %1189 = vrot.lane.b32.xlu0 %v1154_v21, %s2362_s6  ;;  %v1086_v26 = vpop.f32.mrb[23].mxu1 }
 0x32e   : > { %v1141_v16 = vmul.f32 2.0, %v1086_v26 }
 0x32f   : > { %v1158_v44 = vsub.f32 %v1142_v18, %v2701_v50 }
 0x330   : > { %v1157_v45 = vsub.f32 %v1141_v16, %v3169_v27  ;;  %v1996_v28 = vpop.f32.mrb[24].mxu1 }
 0x331   : > { %v1144_v29 = vmul.f32 2.0, %v1996_v28  ;;  %1187 = vrot.lane.b32.xlu0 %v1153_v8, %s2362_s6  ;;  %v1096_v30 = vpop.f32.mrb[25].mxu1  ;;  %v1606_v28 = vld [vmem:[%s3139_s3] ss:$0 sm:$0xff] }
 0x332   : > { %v1143_v31 = vmul.f32 2.0, %v1096_v30 }
 0x333   : > { %v1160_v47 = vsub.f32 %v1144_v29, %v3170_v43 }
 0x334   : > { %v1159_v48 = vsub.f32 %v1143_v31, %v3171_v49  ;;  %v1999_v52 = vpop.f32.mrb[26].mxu1 }
 0x335   : > { %v1146_v55 = vmul.f32 2.0, %v1999_v52  ;;  %1193 = vrot.lane.b32.xlu0 %v1156_v24, %s2362_s6  ;;  %v1106_v58 = vpop.f32.mrb[27].mxu1  ;;  %1201 = vrot.lane.b32.xlu1 %v1160_v47, %s2362_s6 }
 0x336   : > { %v1145_v50 = vmul.f32 2.0, %v1106_v58 }
 0x337   : > { %v1162_v32 = vsub.f32 %v1146_v55, %v3172_v3 }
 0x338   : > { %v1161_v34 = vsub.f32 %v1145_v50, %v3173_v33  ;;  %v2002_v37 = vpop.f32.mrb[28].mxu1 }
 0x339   : > { %v1148_v0 = vmul.f32 2.0, %v2002_v37  ;;  %1191 = vrot.lane.b32.xlu0 %v1155_v42, %s2362_s6  ;;  %v1116_v61 = vpop.f32.mrb[29].mxu1  ;;  %1199 = vrot.lane.b32.xlu1 %v1159_v48, %s2362_s6 }
 0x33a   : > { %v1147_v39 = vmul.f32 2.0, %v1116_v61 }
 0x33b   : > { %v1164_v46 = vsub.f32 %v1148_v0, %v3174_v38 }
 0x33c   : > { %v1163_v35 = vsub.f32 %v1147_v39, %v3175_v36  ;;  %v2005_v11 = vpop.f32.mrb[30].mxu1 }
 0x33d   : > { %v1150_v62 = vmul.f32 2.0, %v2005_v11  ;;  %1195 = vrot.lane.b32.xlu0 %v1157_v45, %s2362_s6  ;;  %v1126_v63 = vpop.f32.mrb[31].mxu1  ;;  %1205 = vrot.lane.b32.xlu1 %v1162_v32, %s2362_s6 }
 0x33e   : > { %v1149_v1 = vmul.f32 2.0, %v1126_v63 }
 0x33f   : > { %v1166_v59 = vsub.f32 %v1150_v62, %v3176_v4 }
 0x340   : > { %v1165_v53 = vsub.f32 %v1149_v1, %v3177_v40 }
 0x341   : > { %1197 = vrot.lane.b32.xlu0 %v1158_v44, %s2362_s6  ;;  %1203 = vrot.lane.b32.xlu1 %v1161_v34, %s2362_s6 }
 0x345   : > { %1209 = vrot.lane.b32.xlu1 %v1164_v46, %s2362_s6 }
 0x349   : > { %1207 = vrot.lane.b32.xlu1 %v1163_v35, %s2362_s6 }
 0x34d   : > { %1211 = vrot.lane.b32.xlu1 %v1165_v53, %s2362_s6 }
 0x351   : > { %1213 = vrot.lane.b32.xlu1 %v1166_v59, %s2362_s6 }
 0x397   : > { %v1186_v54 = vpop.permute.xlu0 %1185 }
 0x398   : > { %1233 = vst.msk [vmem:[#allocation2 + $0x8] sm:$0xff] %vm1231_vm7, %v1186_v54 }
 0x39b   : > { %v1184_v60 = vpop.permute.xlu0 %1183 }
 0x39c   : > { %1232 = vst.msk [vmem:[#allocation2] sm:$0xff] %vm1231_vm7, %v1184_v60 }
 0x39f   : > { %v1190_v10 = vpop.permute.xlu0 %1189  ;;  %v1249_v57 = vld [vmem:[#allocation2 + $0x8] sm:$0xff] }
 0x3a0   : > { %1235 = vst.msk [vmem:[#allocation2 + $0x18] sm:$0xff] %vm1231_vm7, %v1190_v10 }
 0x3a3   : > { %v1188_v2 = vpop.permute.xlu0 %1187  ;;  %v1248_v51 = vld [vmem:[#allocation2] sm:$0xff] }
 0x3a4   : > { %1234 = vst.msk [vmem:[#allocation2 + $0x10] sm:$0xff] %vm1231_vm7, %v1188_v2  ;;  %2022 = vmatprep.mubr.msk.f32.mxu0 %vm1279_vm8, %v1248_v51 }
 0x3a5   : > { %2023 = vmatmul.mubr.msk.f32.vlgmr.msra.gmra.mrb[32].mxu0 %vm1279_vm8, %v1249_v57 }
 0x3a7   : > { %v1194_v13 = vpop.permute.xlu0 %1193  ;;  %v1202_v6 = vpop.permute.xlu1 %1201  ;;  %v1251_v5 = vld [vmem:[#allocation2 + $0x18] sm:$0xff] }
 0x3a8   : > { %1237 = vst.msk [vmem:[#allocation2 + $0x28] sm:$0xff] %vm1231_vm7, %v1194_v13  ;;  %1241 = vst.msk [vmem:[#allocation2 + $0x48] sm:$0xff] %vm1231_vm7, %v1202_v6 }
 0x3ab   : > { %v1192_v56 = vpop.permute.xlu0 %1191  ;;  %v1200_v7 = vpop.permute.xlu1 %1199  ;;  %v1250_v12 = vld [vmem:[#allocation2 + $0x10] sm:$0xff] }
 0x3ac   : > { %1236 = vst.msk [vmem:[#allocation2 + $0x20] sm:$0xff] %vm1231_vm7, %v1192_v56  ;;  %1240 = vst.msk [vmem:[#allocation2 + $0x40] sm:$0xff] %vm1231_vm7, %v1200_v7  ;;  %2025 = vmatprep.mubr.msk.f32.mxu0 %vm1279_vm8, %v1250_v12 }
 0x3ad   : > { %2026 = vmatmul.mubr.msk.f32.gmra.mrb[34].mxu0 %vm1279_vm8, %v1251_v5 }
 0x3af   : > { %v1196_v17 = vpop.permute.xlu0 %1195  ;;  %v1206_v19 = vpop.permute.xlu1 %1205  ;;  %v1253_v8 = vld [vmem:[#allocation2 + $0x28] sm:$0xff] }
 0x3b0   : > { %1238 = vst.msk [vmem:[#allocation2 + $0x30] sm:$0xff] %vm1231_vm7, %v1196_v17  ;;  %1243 = vst.msk [vmem:[#allocation2 + $0x58] sm:$0xff] %vm1231_vm7, %v1206_v19  ;;  %v1257_v22 = vld [vmem:[#allocation2 + $0x48] sm:$0xff] }
 0x3b3   : > { %v1198_v15 = vpop.permute.xlu0 %1197  ;;  %v1204_v9 = vpop.permute.xlu1 %1203  ;;  %v1252_v20 = vld [vmem:[#allocation2 + $0x20] sm:$0xff] }
 0x3b4   : > { %v1256_v21 = vld [vmem:[#allocation2 + $0x40] sm:$0xff]  ;;  %1239 = vst.msk [vmem:[#allocation2 + $0x38] sm:$0xff] %vm1231_vm7, %v1198_v15  ;;  %1242 = vst.msk [vmem:[#allocation2 + $0x50] sm:$0xff] %vm1231_vm7, %v1204_v9  ;;  %2028 = vmatprep.mubr.msk.f32.mxu0 %vm1279_vm8, %v1252_v20 }
 0x3b5   : > { %2034 = vmatprep.mubr.msk.f32.mxu1 %vm1279_vm8, %v1256_v21  ;;  %2029 = vmatmul.mubr.msk.f32.gmra.mrb[36].mxu0 %vm1279_vm8, %v1253_v8 }
 0x3b6   : > { %2035 = vmatmul.mubr.msk.f32.vlgmr.msra.gmra.mrb[32].mxu1 %vm1279_vm8, %v1257_v22 }
 0x3b7   : > { %v1210_v14 = vpop.permute.xlu1 %1209  ;;  %v1254_v41 = vld [vmem:[#allocation2 + $0x30] sm:$0xff]  ;;  %v1259_v25 = vld [vmem:[#allocation2 + $0x58] sm:$0xff] }
 0x3b8   : > { %1245 = vst.msk [vmem:[#allocation2 + $0x68] sm:$0xff] %vm1231_vm7, %v1210_v14  ;;  %2031 = vmatprep.mubr.msk.f32.mxu0 %vm1279_vm8, %v1254_v41 }
 0x3bb   : > { %v1208_v23 = vpop.permute.xlu1 %1207  ;;  %v1255_v24 = vld [vmem:[#allocation2 + $0x38] sm:$0xff]  ;;  %v1258_v42 = vld [vmem:[#allocation2 + $0x50] sm:$0xff] }
 0x3bc   : > { %1244 = vst.msk [vmem:[#allocation2 + $0x60] sm:$0xff] %vm1231_vm7, %v1208_v23  ;;  %2032 = vmatmul.mubr.msk.f32.gmra.mrb[38].mxu0 %vm1279_vm8, %v1255_v24  ;;  %2037 = vmatprep.mubr.msk.f32.mxu1 %vm1279_vm8, %v1258_v42 }
 0x3bd   : > { %2038 = vmatmul.mubr.msk.f32.gmra.mrb[34].mxu1 %vm1279_vm8, %v1259_v25 }
 0x3bf   : > { %v1212_v18 = vpop.permute.xlu1 %1211  ;;  %v1261_v44 = vld [vmem:[#allocation2 + $0x68] sm:$0xff] }
 0x3c0   : > { %1246 = vst.msk [vmem:[#allocation2 + $0x70] sm:$0xff] %vm1231_vm7, %v1212_v18 }
 0x3c3   : > { %v1214_v26 = vpop.permute.xlu1 %1213  ;;  %v1260_v16 = vld [vmem:[#allocation2 + $0x60] sm:$0xff] }
 0x3c4   : > { %1247 = vst.msk [vmem:[#allocation2 + $0x78] sm:$0xff] %vm1231_vm7, %v1214_v26  ;;  %2040 = vmatprep.mubr.msk.f32.mxu1 %vm1279_vm8, %v1260_v16 }
 0x3c5   : > { %2041 = vmatmul.mubr.msk.f32.gmra.mrb[36].mxu1 %vm1279_vm8, %v1261_v44 }
 0x3c7   : > { %v1262_v27 = vld [vmem:[#allocation2 + $0x70] sm:$0xff] }
 0x3c8   : > { %2043 = vmatprep.mubr.msk.f32.mxu1 %vm1279_vm8, %v1262_v27 }
 0x3cb   : > { %v1263_v45 = vld [vmem:[#allocation2 + $0x78] sm:$0xff] }
 0x3cc   : > { %2044 = vmatmul.mubr.msk.f32.gmra.mrb[38].mxu1 %vm1279_vm8, %v1263_v45 }
 0x478   : > { %v2024_v29 = vpop.f32.mrb[32].mxu0 }
 0x479   : > { %v1404_v30 = vadd.f32 %v2024_v29, %v1606_v28  ;;  %v1398_v31 = vpop.f32.mrb[33].mxu0 }
 0x47a   : > { %v1399_v43 = vadd.f32 %v1606_v28, %v1398_v31 }
 0x47b   : > { %1478 = vst [vmem:[%s3066_s9 + $0x8] sm:$0xff] %v1404_v30 }
 0x47c   : > { %1477 = vst [vmem:[%s3066_s9] sm:$0xff] %v1399_v43 }
 0x480   : > { %v2027_v47 = vpop.f32.mrb[34].mxu0 }
 0x481   : > { %v1414_v49 = vadd.f32 %v2027_v47, %v1606_v28  ;;  %v1408_v48 = vpop.f32.mrb[35].mxu0 }
 0x482   : > { %v1409_v52 = vadd.f32 %v1606_v28, %v1408_v48 }
 0x483   : > { %1480 = vst [vmem:[%s3066_s9 + $0x18] sm:$0xff] %v1414_v49 }
 0x484   : > { %1479 = vst [vmem:[%s3066_s9 + $0x10] sm:$0xff] %v1409_v52 }
 0x488   : > { %v2030_v55 = vpop.f32.mrb[36].mxu0 }
 0x489   : > { %v2036_v58 = vpop.f32.mrb[32].mxu1  ;;  %v1424_v50 = vadd.f32 %v2030_v55, %v1606_v28  ;;  %v1418_v32 = vpop.f32.mrb[37].mxu0 }
 0x48a   : > { %v1444_v3 = vadd.f32 %v2036_v58, %v1606_v28  ;;  %v1438_v33 = vpop.f32.mrb[33].mxu1  ;;  %v1419_v34 = vadd.f32 %v1606_v28, %v1418_v32 }
 0x48b   : > { %v1439_v37 = vadd.f32 %v1606_v28, %v1438_v33  ;;  %1482 = vst [vmem:[%s3066_s9 + $0x28] sm:$0xff] %v1424_v50 }
 0x48c   : > { %1486 = vst [vmem:[%s3066_s9 + $0x48] sm:$0xff] %v1444_v3  ;;  %1481 = vst [vmem:[%s3066_s9 + $0x20] sm:$0xff] %v1419_v34 }
 0x48d   : > { %1485 = vst [vmem:[%s3066_s9 + $0x40] sm:$0xff] %v1439_v37 }
 0x48f   : > { %v2033_v0 = vpop.f32.mrb[38].mxu0 }
 0x490   : > { %v1434_v61 = vadd.f32 %v2033_v0, %v1606_v28  ;;  %v1428_v39 = vpop.f32.mrb[39].mxu0  ;;  %v2039_v38 = vpop.f32.mrb[34].mxu1 }
 0x491   : > { %v1429_v46 = vadd.f32 %v1606_v28, %v1428_v39  ;;  %v1454_v36 = vadd.f32 %v2039_v38, %v1606_v28  ;;  %v1448_v35 = vpop.f32.mrb[35].mxu1 }
 0x492   : > { %1484 = vst [vmem:[%s3066_s9 + $0x38] sm:$0xff] %v1434_v61  ;;  %v1449_v11 = vadd.f32 %v1606_v28, %v1448_v35 }
 0x493   : > { %1483 = vst [vmem:[%s3066_s9 + $0x30] sm:$0xff] %v1429_v46  ;;  %1488 = vst [vmem:[%s3066_s9 + $0x58] sm:$0xff] %v1454_v36 }
 0x494   : > { %1487 = vst [vmem:[%s3066_s9 + $0x50] sm:$0xff] %v1449_v11 }
 0x498   : > { %v2042_v62 = vpop.f32.mrb[36].mxu1 }
 0x499   : > { %v1464_v63 = vadd.f32 %v2042_v62, %v1606_v28  ;;  %v1458_v1 = vpop.f32.mrb[37].mxu1 }
 0x49a   : > { %v1459_v4 = vadd.f32 %v1606_v28, %v1458_v1 }
 0x49b   : > { %1490 = vst [vmem:[%s3066_s9 + $0x68] sm:$0xff] %v1464_v63 }
 0x49c   : > { %1489 = vst [vmem:[%s3066_s9 + $0x60] sm:$0xff] %v1459_v4 }
 0x49f   : > { %v2045_v59 = vpop.f32.mrb[38].mxu1 }
 0x4a0   : > { %v1474_v40 = vadd.f32 %v2045_v59, %v1606_v28  ;;  %v1468_v53 = vpop.f32.mrb[39].mxu1 }
 0x4a1   : > { %v1469_v54 = vadd.f32 %v1606_v28, %v1468_v53 }
 0x4a2   : > { %1492 = vst [vmem:[%s3066_s9 + $0x78] sm:$0xff] %v1474_v40 }
 0x4a3   : > { %1491 = vst [vmem:[%s3066_s9 + $0x70] sm:$0xff] %v1469_v54 }
 0x4a4   : > { %2300 = shalt.err (!%p2297_p7)
}
 0x4a5   : > { %s2301_s30 = scalar_lea.hbm %s3087_s14, 2048  ;;  %s2305_s27 = scalar_lea.hbm %s3140_s4, 4096 }
 0x4a6   : > { %p2302_p8 = scmp.ne.s32.totalorder %s3087_s14, %s2301_s30  ;;  %p2306_p1 = scmp.lt.u32.totalorder %s3087_s14, %s3140_s4 }
 0x4a7   : > { %p2307_p0 = scmp.lt.u32.totalorder %s2305_s27, %s2301_s30  ;;  %p2309_p6 = scmp.lt.u32.totalorder %s2301_s30, %s3087_s14 }
 0x4a8   : > { %p2303_p11 = pnand %p2302_p8, %p3178_p9 }
 0x4a9   : > { %p2308_p5 = por %p2307_p0, %p2306_p1 }
 0x4aa   : > { %p2304_p13 = pneg %p2303_p11 }
 0x4ab   : > { %p2310_p10 = por %p2309_p6, %p2308_p5 }
 0x4ad   : > { %p2311_p12 = pnand %p2310_p10, %p2304_p13 }
 0x4af   : > { %2314 = shalt.err (!%p2311_p12)
}
 0x4b0   : > { %s2364_s8 = smov 128   ;;  %s2365_s9 = smov 8  }
 0x4b1   : > { %2204 = dma.vmem_to_hbm [thread:$0]  (%p3178_p9), %s3089_s11, 2048, %s3087_s14, %s3095_s20, %s2364_s8, %s2364_s8, %s2365_s9  }
 0x4b2 PF: > { %p2216_p2 = scmp.ge.s32.totalorder %s2353_s18, 2  ;;  %s1522_s10 = sand.u32 1, %s2341_s15  }
 0x4b3   : > { %p3179_p3 = scmp.ne.s32.totalorder %s3154_s26, 0  ;;  %s1523_s12 = scalar_lea.sflag [#allocation5], %s1522_s10 }
 0x4b5   : > { %p2211_p4 = pnand %p2216_p2, %p3179_p3 }
 0x4b7   : > { %2336 = dma.done.wait (!%p2211_p4), %s1523_s12, 2048  }
 0x4b8   : > { %2338 = vsyncadd (!%p2211_p4), %s1523_s12, 4294965248  ;;  %p15_p7 = scmp.ge.s32.totalorder %s2416_s21, 4   ;;  %s3180_s15 = smov %s2345_s16 }
 0x4b9   : > { %s3181_s16 = smov %s2349_s17  ;;  %s3182_s17 = smov %s2427_s24 }
 0x4ba   : > { %s3183_s18 = smov %s2416_s21  ;;  %17 = sbr.rel (!%p15_p7) target bundleno = 4 (0x4), region = 77 }
 0x4c1   :  { %1528 = vsyncpa [#allocation4], 1 }
 0x4c2   :  { %1530 = vsyncpa [#allocation4 + $0x1], 1 }
 0x4c3   :  { %1531 = vsyncpa [#allocation5], 1 }
 0x4c4   :  { %1533 = vsyncpa [#allocation5 + $0x1], 1 }

</bundles_post_ra>
